<compile_context>
chip_gen: v6e
topology: v6e:2x2x1
jax: 0.10.0
libtpu: 0.0.40
codegen_flags: <defaults>
</compile_context>

<pallas_src>
import functools
import math

import jax
import jax.numpy as jnp
from jax.experimental import pallas as pl
from jax.experimental.pallas import tpu as pltpu

# ---- small synthetic config (real model: hidden=4096, heads=32, layers=28) ----
SEQ = 8
BATCH = 2
HIDDEN = 32
NUM_HEADS = 4
HEAD_DIM = HIDDEN // NUM_HEADS
INNER = 4 * HIDDEN
NUM_LAYERS = 2            # alpha = sqrt(2 * num_layers) GLM residual scaling
BLOCK_ID = 0              # query_key_layer_scaling_coeff = BLOCK_ID + 1
PAST_SEQ = 4
MAX_POS = 64
LN_EPS = 1e-5


def _tile(dim, target, granularity):
    """Largest tile <= target that divides dim and is a multiple of
    `granularity` (TPU (8,128)/bf16 layout safe), else the full dim."""
    if dim <= target:
        return dim
    t = (target // granularity) * granularity
    while t >= granularity:
        if dim % t == 0:
            return t
        t -= granularity
    return dim


# ----------------------------- Pallas kernels ------------------------------

def _layernorm_kernel(x_ref, w_ref, b_ref, o_ref, *, eps):
    x = x_ref[...].astype(jnp.float32)
    mean = jnp.mean(x, axis=-1, keepdims=True)
    var = jnp.mean(jnp.square(x - mean), axis=-1, keepdims=True)
    y = (x - mean) * jax.lax.rsqrt(var + eps)
    o_ref[...] = (y * w_ref[...] + b_ref[...]).astype(o_ref.dtype)


def layernorm(x, w, b, eps=LN_EPS, out_dtype=None):
    R, H = x.shape
    out_dtype = out_dtype or x.dtype
    tr = _tile(R, 512, 16)
    return pl.pallas_call(
        functools.partial(_layernorm_kernel, eps=eps),
        out_shape=jax.ShapeDtypeStruct((R, H), out_dtype),
        grid=(R // tr,),
        in_specs=[
            pl.BlockSpec((tr, H), lambda i: (i, 0)),
            pl.BlockSpec((1, H), lambda i: (0, 0)),
            pl.BlockSpec((1, H), lambda i: (0, 0)),
        ],
        out_specs=pl.BlockSpec((tr, H), lambda i: (i, 0)),
        compiler_params=pltpu.CompilerParams(
            dimension_semantics=("parallel",)),
    )(x, w.reshape(1, H), b.reshape(1, H))


def _linear_kernel(x_ref, w_ref, b_ref, *rest, activation, alpha):
    # x [tm, tk] bf16, w [tn, tk] bf16 (torch [out,in] layout), b [1, tn] f32,
    # optional residual [tm, tn]; f32 accumulator scratch.
    if len(rest) == 3:
        r_ref, o_ref, acc_ref = rest
    else:
        r_ref = None
        o_ref, acc_ref = rest

    k = pl.program_id(2)

    @pl.when(k == 0)
    def _():
        acc_ref[...] = jnp.zeros_like(acc_ref)

    acc_ref[...] += jax.lax.dot_general(
        x_ref[...], w_ref[...], (((1,), (1,)), ((), ())),
        preferred_element_type=jnp.float32)

    @pl.when(k == pl.num_programs(2) - 1)
    def _():
        y = acc_ref[...] + b_ref[...].astype(jnp.float32)
        if activation == "gelu":
            # ChatGLM-6B tanh-approx GELU, kept in f32 registers.
            y = 0.5 * y * (1.0 + jnp.tanh(
                0.7978845608028654 * (y + 0.044715 * y * y * y)))
        if r_ref is not None:
            y = y + alpha * r_ref[...].astype(jnp.float32)   # fused GLM residual
        o_ref[...] = y.astype(o_ref.dtype)


def linear(x, w, b, activation=None, residual=None, alpha=1.0, out_dtype=None):
    """y = x @ w.T + b (torch Linear layout), optional GELU and fused
    `y += alpha * residual`, bf16 MXU inputs with f32 accumulation."""
    M, K = x.shape
    N = w.shape[0]
    out_dtype = out_dtype or x.dtype

    xb = x.astype(jnp.bfloat16)
    wb = w.astype(jnp.bfloat16)            # no-op if pre-cast at param prep
    b2 = b.reshape(1, N).astype(jnp.float32)

    tm = _tile(M, 256, 16)
    tn = _tile(N, 256, 128)
    tk = _tile(K, 512, 128)
    grid = (M // tm, N // tn, K // tk)

    in_specs = [
        pl.BlockSpec((tm, tk), lambda i, j, k: (i, k)),
        pl.BlockSpec((tn, tk), lambda i, j, k: (j, k)),
        pl.BlockSpec((1, tn), lambda i, j, k: (0, j)),
    ]
    args = [xb, wb, b2]
    if residual is not None:
        in_specs.append(pl.BlockSpec((tm, tn), lambda i, j, k: (i, j)))
        args.append(residual)

    bytes_accessed = 2 * M * K + 2 * N * K + 4 * N + M * N * jnp.dtype(out_dtype).itemsize
    if residual is not None:
        bytes_accessed += int(residual.size) * residual.dtype.itemsize

    return pl.pallas_call(
        functools.partial(_linear_kernel, activation=activation, alpha=alpha),
        out_shape=jax.ShapeDtypeStruct((M, N), out_dtype),
        grid=grid,
        in_specs=in_specs,
        out_specs=pl.BlockSpec((tm, tn), lambda i, j, k: (i, j)),
        scratch_shapes=[pltpu.VMEM((tm, tn), jnp.float32)],
        compiler_params=pltpu.CompilerParams(
            dimension_semantics=("parallel", "parallel", "arbitrary"),
            vmem_limit_bytes=32 * 1024 * 1024),
        cost_estimate=pl.CostEstimate(
            flops=2 * M * N * K,
            transcendentals=M * N if activation == "gelu" else 0,
            bytes_accessed=bytes_accessed),
    )(*args)


def _flash_attn_kernel(q_ref, k_ref, v_ref, mask_ref, o_ref,
                       m_sc, l_sc, acc_sc, *, q_scale, fill):
    # Per (batch, head, q-tile): online softmax over Sk tiles.
    # q [tq,hd] bf16, k/v [tk,hd] bf16, mask [tq,tk] bf16 (1.0 = masked).
    kt = pl.program_id(3)

    @pl.when(kt == 0)
    def _():
        m_sc[...] = jnp.full_like(m_sc, -jnp.inf)
        l_sc[...] = jnp.zeros_like(l_sc)
        acc_sc[...] = jnp.zeros_like(acc_sc)

    s = jax.lax.dot_general(
        q_ref[...], k_ref[...], (((1,), (1,)), ((), ())),
        preferred_element_type=jnp.float32)
    # coeff folded into the scale and the masked-fill constant
    # (matches torch: scores/(sqrt(hd)*coeff) -> masked_fill(-1e4) -> *coeff).
    s = s * q_scale
    s = jnp.where(mask_ref[...] > 0.5, fill, s)

    m_prev = m_sc[...]
    m_new = jnp.maximum(m_prev, jnp.max(s, axis=-1, keepdims=True))
    corr = jnp.exp(m_prev - m_new)
    p = jnp.exp(s - m_new)
    l_sc[...] = corr * l_sc[...] + jnp.sum(p, axis=-1, keepdims=True)
    acc_sc[...] = corr * acc_sc[...] + jnp.dot(
        p.astype(v_ref.dtype), v_ref[...], preferred_element_type=jnp.float32)
    m_sc[...] = m_new

    @pl.when(kt == pl.num_programs(3) - 1)
    def _():
        inv = pl.reciprocal(l_sc[...], approx=True)
        o_ref[...] = (acc_sc[...] * inv).astype(o_ref.dtype)


def attention(q, k, v, mask, layer_id):
    # q: [B, nh, Sq, hd] bf16; k, v: [B, nh, Sk, hd] bf16; mask: [B,1,Sq,Sk] bf16.
    B, nh, Sq, hd = q.shape
    Sk = k.shape[2]
    coeff = float(layer_id + 1)
    q_scale = 1.0 / math.sqrt(hd)
    fill = -10000.0 * coeff

    tq = _tile(Sq, 256, 16)
    tks = _tile(Sk, 512, 128)
    grid = (B, nh, Sq // tq, Sk // tks)

    return pl.pallas_call(
        functools.partial(_flash_attn_kernel, q_scale=q_scale, fill=fill),
        out_shape=jax.ShapeDtypeStruct((B, nh, Sq, hd), jnp.bfloat16),
        grid=grid,
        in_specs=[
            pl.BlockSpec((None, None, tq, hd), lambda b, h, qi, kt: (b, h, qi, 0)),
            pl.BlockSpec((None, None, tks, hd), lambda b, h, qi, kt: (b, h, kt, 0)),
            pl.BlockSpec((None, None, tks, hd), lambda b, h, qi, kt: (b, h, kt, 0)),
            pl.BlockSpec((None, None, tq, tks), lambda b, h, qi, kt: (b, 0, qi, kt)),
        ],
        out_specs=pl.BlockSpec((None, None, tq, hd),
                               lambda b, h, qi, kt: (b, h, qi, 0)),
        scratch_shapes=[
            pltpu.VMEM((tq, 1), jnp.float32),
            pltpu.VMEM((tq, 1), jnp.float32),
            pltpu.VMEM((tq, hd), jnp.float32),
        ],
        compiler_params=pltpu.CompilerParams(
            dimension_semantics=("parallel", "parallel", "parallel", "arbitrary"),
            vmem_limit_bytes=32 * 1024 * 1024),
    )(q, k, v, mask)


# ------------------------------- glue (JAX) --------------------------------

def _rotary_tables(rdim):
    inv_freq = 1.0 / (10000.0 ** (jnp.arange(0, rdim, 2, dtype=jnp.float32) / rdim))
    t = jnp.arange(MAX_POS, dtype=jnp.float32)
    freqs = jnp.einsum("i,j->ij", t, inv_freq)
    emb = jnp.concatenate([freqs, freqs], axis=-1)        # [MAX_POS, rdim]
    return jnp.cos(emb), jnp.sin(emb)


def apply_rotary_2d(q, k, position_ids):
    # q, k: [S, B, nh, hd] f32; position_ids: [B, 2, S] int32
    # TODO(synk): rotary table gather (F.embedding) kept in plain JAX glue.
    hd = q.shape[-1]
    rdim = hd // 2
    cos_t, sin_t = _rotary_tables(rdim)
    pos0 = position_ids[:, 0, :].T                         # [S, B]
    pos1 = position_ids[:, 1, :].T

    def rot(x, pos):
        c = cos_t[pos][:, :, None, :]                      # [S, B, 1, rdim]
        s = sin_t[pos][:, :, None, :]
        x1, x2 = x[..., : rdim // 2], x[..., rdim // 2:]
        rx = jnp.concatenate([-x2, x1], axis=-1)
        return x * c + rx * s

    q1, q2 = q[..., :rdim], q[..., rdim:]
    k1, k2 = k[..., :rdim], k[..., rdim:]
    q1, k1 = rot(q1, pos0), rot(k1, pos0)
    q2, k2 = rot(q2, pos1), rot(k2, pos1)
    return (jnp.concatenate([q1, q2], axis=-1),
            jnp.concatenate([k1, k2], axis=-1))


def glm_block_forward(params, hidden_states, attention_mask, position_ids,
                      past_kv, block_id=BLOCK_ID, apply_final_ln=True):
    S, B, H = hidden_states.shape
    nh, hd = NUM_HEADS, H // NUM_HEADS
    alpha = (2.0 * NUM_LAYERS) ** 0.5

    x2d = hidden_states.reshape(S * B, H)
    # ln1 emits bf16 directly (feeds the bf16 QKV matmul; stats stay f32).
    attn_input = layernorm(x2d, params["ln1_w"], params["ln1_b"],
                           out_dtype=jnp.bfloat16)

    qkv = linear(attn_input, params["wqkv"], params["bqkv"],
                 out_dtype=jnp.float32)                              # [S*B, 3H]
    qkv = qkv.reshape(S, B, nh, 3 * hd)
    q, k, v = jnp.split(qkv, 3, axis=-1)                             # [S,B,nh,hd]

    q, k = apply_rotary_2d(q, k, position_ids)

    past_key, past_value = past_kv[0], past_kv[1]                    # [Sp,B,nh,hd]
    key = jnp.concatenate([past_key, k], axis=0)                     # [Sk,B,nh,hd]
    value = jnp.concatenate([past_value, v], axis=0)
    presents = jnp.stack([key, value])                               # f32 KV cache

    # TODO(synk): layout transposes to [B,nh,S,hd] stay in XLA; folding them
    # into the attention BlockSpecs needs size-1 second-minor blocks.
    qb = jnp.transpose(q, (1, 2, 0, 3)).astype(jnp.bfloat16)
    kb = jnp.transpose(key, (1, 2, 0, 3)).astype(jnp.bfloat16)
    vb = jnp.transpose(value, (1, 2, 0, 3)).astype(jnp.bfloat16)
    ctx = attention(qb, kb, vb, attention_mask.astype(jnp.bfloat16), block_id)
    ctx = jnp.transpose(ctx, (2, 0, 1, 3)).reshape(S * B, H)         # bf16

    # dense with fused GLM residual: hs = attn_input*alpha + dense(ctx)
    hs = linear(ctx, params["wdense"], params["bdense"],
                residual=attn_input, alpha=alpha, out_dtype=jnp.float32)

    mlp_in = layernorm(hs, params["ln2_w"], params["ln2_b"],
                       out_dtype=jnp.bfloat16)
    h4 = linear(mlp_in, params["w_h4h"], params["b_h4h"], activation="gelu",
                out_dtype=jnp.bfloat16)                              # bf16 intermediate
    out2d = linear(h4, params["w_4hh"], params["b_4hh"],
                   residual=mlp_in, alpha=alpha, out_dtype=jnp.float32)

    if apply_final_ln:
        # torch: LN(all rows) then .view(-1, H)[-1]; LN is row-wise, so only
        # normalize the single row we keep.
        last = out2d[-1:, :]
        last = layernorm(last, params["lnf_w"], params["lnf_b"],
                         out_dtype=jnp.float32)
        out = last.reshape(1, 1, H)
    else:
        out = out2d.reshape(S, B, H)

    return out, presents


def init_params(key):
    ks = jax.random.split(key, 8)
    def w(k, shape, scale=0.02):
        return scale * jax.random.normal(k, shape, dtype=jnp.float32)
    return {
        "ln1_w": jnp.ones((HIDDEN,), jnp.float32),
        "ln1_b": jnp.zeros((HIDDEN,), jnp.float32),
        "wqkv": w(ks[0], (3 * HIDDEN, HIDDEN)),          # torch [out, in] layout
        "bqkv": w(ks[1], (3 * HIDDEN,)),
        "wdense": w(ks[2], (HIDDEN, HIDDEN)),
        "bdense": w(ks[3], (HIDDEN,)),
        "ln2_w": jnp.ones((HIDDEN,), jnp.float32),
        "ln2_b": jnp.zeros((HIDDEN,), jnp.float32),
        "w_h4h": w(ks[4], (INNER, HIDDEN)),
        "b_h4h": w(ks[5], (INNER,)),
        "w_4hh": w(ks[6], (HIDDEN, INNER)),
        "b_4hh": w(ks[7], (HIDDEN,)),
        "lnf_w": jnp.ones((HIDDEN,), jnp.float32),
        "lnf_b": jnp.zeros((HIDDEN,), jnp.float32),
    }


def prepare_params(params):
    """One-time prep: matmul weights to bf16 (MXU path); no per-call transpose
    or cast is needed afterwards (torch [out,in] layout is kept)."""
    p = dict(params)
    for name in ("wqkv", "wdense", "w_h4h", "w_4hh"):
        p[name] = params[name].astype(jnp.bfloat16)
    return p


if __name__ == "__main__":
    key = jax.random.PRNGKey(0)
    k_in, k_kv, k_par = jax.random.split(key, 3)

    params = prepare_params(init_params(k_par))

    hidden_states = jax.random.normal(k_in, (SEQ, BATCH, HIDDEN), jnp.float32)

    # causal mask over (past + new); 1.0 = masked
    sk = PAST_SEQ + SEQ
    qpos = PAST_SEQ + jnp.arange(SEQ)[:, None]
    kpos = jnp.arange(sk)[None, :]
    mask = (kpos > qpos).astype(jnp.float32)                        # [S, Sk]
    attention_mask = jnp.broadcast_to(mask, (BATCH, 1, SEQ, sk))

    # 2D position ids [B, 2, S]
    pos0 = jnp.broadcast_to(PAST_SEQ + jnp.arange(SEQ, dtype=jnp.int32), (BATCH, SEQ))
    pos1 = jnp.broadcast_to(jnp.arange(SEQ, dtype=jnp.int32), (BATCH, SEQ))
    position_ids = jnp.stack([pos0, pos1], axis=1)

    # past kv: stacked (key, value), each [past_seq, batch, heads, head_dim]
    past_kv = 0.1 * jax.random.normal(
        k_kv, (2, PAST_SEQ, BATCH, NUM_HEADS, HEAD_DIM), jnp.float32)

    fwd = jax.jit(functools.partial(glm_block_forward,
                                    block_id=BLOCK_ID, apply_final_ln=True))
    out, presents = fwd(params, hidden_states, attention_mask, position_ids, past_kv)
    out, presents = jax.block_until_ready((out, presents))

    assert out.shape == (1, 1, HIDDEN), out.shape
    assert presents.shape == (2, PAST_SEQ + SEQ, BATCH, NUM_HEADS, HEAD_DIM), presents.shape
    assert bool(jnp.all(jnp.isfinite(out))) and bool(jnp.all(jnp.isfinite(presents)))
    print("KERNEL_OK")
</pallas_src>

<mosaic_0001>
module attributes {stable_mosaic.version = 11 : i64} {
  func.func @_linear_kernel(%arg0: i32, %arg1: i32, %arg2: i32, %arg3: memref<16x32xbf16, #tpu.memory_space<vmem>>, %arg4: memref<96x32xbf16, #tpu.memory_space<vmem>>, %arg5: memref<1x96xf32, #tpu.memory_space<vmem>>, %arg6: memref<16x96xf32, #tpu.memory_space<vmem>>, %arg7: memref<16x96xf32, #tpu.memory_space<vmem>>) attributes {dimension_semantics = [#tpu.dimension_semantics<parallel>, #tpu.dimension_semantics<parallel>, #tpu.dimension_semantics<arbitrary>], iteration_bounds = array<i64: 1, 1, 1>, scalar_prefetch = 0 : i64, scratch_operands = 1 : i64, tpu.core_type = #tpu.core_type<tc>, window_params = [{transform_indices = @transform_0, window_bounds = array<i64: 16, 32>}, {transform_indices = @transform_1, window_bounds = array<i64: 96, 32>}, {transform_indices = @transform_2, window_bounds = array<i64: 1, 96>}, {transform_indices = @transform_3, window_bounds = array<i64: 16, 96>}]} {
    %c0_i32 = arith.constant 0 : i32
    %0 = arith.cmpi eq, %arg2, %c0_i32 : i32
    %1 = arith.extui %0 : i1 to i32
    %c0_i32_0 = arith.constant 0 : i32
    %2 = arith.cmpi ne, %1, %c0_i32_0 : i32
    scf.if %2 {
      %cst_10 = arith.constant 0.000000e+00 : f32
      %12 = vector.broadcast %cst_10 : f32 to vector<16x96xf32>
      %c0_11 = arith.constant 0 : index
      %c0_12 = arith.constant 0 : index
      %13 = vector.load %arg7[%c0_11, %c0_12] : memref<16x96xf32, #tpu.memory_space<vmem>>, vector<16x96xf32>
      tpu.vector_store %arg7[%c0_11, %c0_12], %12 {strides = array<i32>} : memref<16x96xf32, #tpu.memory_space<vmem>>, vector<16x96xf32>,
    } else {
    }
    %c0 = arith.constant 0 : index
    %c0_1 = arith.constant 0 : index
    %3 = vector.load %arg7[%c0, %c0_1] : memref<16x96xf32, #tpu.memory_space<vmem>>, vector<16x96xf32>
    %c0_2 = arith.constant 0 : index
    %c0_3 = arith.constant 0 : index
    %4 = vector.load %arg3[%c0_2, %c0_3] : memref<16x32xbf16, #tpu.memory_space<vmem>>, vector<16x32xbf16>
    %c0_4 = arith.constant 0 : index
    %c0_5 = arith.constant 0 : index
    %5 = vector.load %arg4[%c0_4, %c0_5] : memref<96x32xbf16, #tpu.memory_space<vmem>>, vector<96x32xbf16>
    %cst = arith.constant dense<0.000000e+00> : vector<16x96xf32>
    %6 = tpu.matmul %4, %5, %cst {dimension_numbers = #tpu.dot_dimension_numbers<[1], [1], [0], [0], [0, 0, 1, 0], [], []>} : vector<16x32xbf16>, vector<96x32xbf16>, vector<16x96xf32> -> vector<16x96xf32>
    %7 = arith.addf %3, %6 : vector<16x96xf32>
    %c0_6 = arith.constant 0 : index
    %c0_7 = arith.constant 0 : index
    %8 = vector.load %arg7[%c0_6, %c0_7] : memref<16x96xf32, #tpu.memory_space<vmem>>, vector<16x96xf32>
    tpu.vector_store %arg7[%c0_6, %c0_7], %7 {strides = array<i32>} : memref<16x96xf32, #tpu.memory_space<vmem>>, vector<16x96xf32>,
    %c0_i32_8 = arith.constant 0 : i32
    %9 = arith.cmpi eq, %arg2, %c0_i32_8 : i32
    %10 = arith.extui %9 : i1 to i32
    %c0_i32_9 = arith.constant 0 : i32
    %11 = arith.cmpi ne, %10, %c0_i32_9 : i32
    scf.if %11 {
      %c0_10 = arith.constant 0 : index
      %c0_11 = arith.constant 0 : index
      %12 = vector.load %arg7[%c0_10, %c0_11] : memref<16x96xf32, #tpu.memory_space<vmem>>, vector<16x96xf32>
      %c0_12 = arith.constant 0 : index
      %c0_13 = arith.constant 0 : index
      %13 = vector.load %arg5[%c0_12, %c0_13] : memref<1x96xf32, #tpu.memory_space<vmem>>, vector<1x96xf32>
      %14 = vector.broadcast %13 : vector<1x96xf32> to vector<16x96xf32>
      %15 = arith.addf %12, %14 : vector<16x96xf32>
      %c0_14 = arith.constant 0 : index
      %c0_15 = arith.constant 0 : index
      %16 = vector.load %arg6[%c0_14, %c0_15] : memref<16x96xf32, #tpu.memory_space<vmem>>, vector<16x96xf32>
      tpu.vector_store %arg6[%c0_14, %c0_15], %15 {strides = array<i32>} : memref<16x96xf32, #tpu.memory_space<vmem>>, vector<16x96xf32>,
    } else {
    }
    return
  }
  func.func @transform_0(%arg0: i32, %arg1: i32, %arg2: i32) -> (i32, i32) {
    %c0_i32 = arith.constant 0 : i32
    return %arg0, %arg2 : i32, i32
  }
  func.func @transform_1(%arg0: i32, %arg1: i32, %arg2: i32) -> (i32, i32) {
    %c0_i32 = arith.constant 0 : i32
    return %arg1, %arg2 : i32, i32
  }
  func.func @transform_2(%arg0: i32, %arg1: i32, %arg2: i32) -> (i32, i32) {
    %c0_i32 = arith.constant 0 : i32
    %c0_i32_0 = arith.constant 0 : i32
    return %c0_i32, %arg1 : i32, i32
  }
  func.func @transform_3(%arg0: i32, %arg1: i32, %arg2: i32) -> (i32, i32) {
    %c0_i32 = arith.constant 0 : i32
    return %arg0, %arg1 : i32, i32
  }
}

module attributes {stable_mosaic.version = 11 : i64} {
  func.func @_layernorm_kernel(%arg0: i32, %arg1: memref<16x32xf32, #tpu.memory_space<vmem>>, %arg2: memref<1x32xf32, #tpu.memory_space<vmem>>, %arg3: memref<1x32xf32, #tpu.memory_space<vmem>>, %arg4: memref<16x32xbf16, #tpu.memory_space<vmem>>) attributes {dimension_semantics = [#tpu.dimension_semantics<parallel>], iteration_bounds = array<i64: 1>, scalar_prefetch = 0 : i64, scratch_operands = 0 : i64, tpu.core_type = #tpu.core_type<tc>, window_params = [{transform_indices = @transform_0, window_bounds = array<i64: 16, 32>}, {pipeline_mode = #tpu.pipeline_mode<synchronous>, transform_indices = @transform_1, window_bounds = array<i64: 1, 32>}, {pipeline_mode = #tpu.pipeline_mode<synchronous>, transform_indices = @transform_2, window_bounds = array<i64: 1, 32>}, {transform_indices = @transform_3, window_bounds = array<i64: 16, 32>}]} {
    %c0 = arith.constant 0 : index
    %c0_0 = arith.constant 0 : index
    %0 = vector.load %arg1[%c0, %c0_0] : memref<16x32xf32, #tpu.memory_space<vmem>>, vector<16x32xf32>
    %cst = arith.constant dense<0.000000e+00> : vector<16xf32>
    %1 = vector.multi_reduction <add>, %0, %cst [1] : vector<16x32xf32> to vector<16xf32>
    %2 = vector.shape_cast %1 : vector<16xf32> to vector<16x1xf32>
    %cst_1 = arith.constant 3.200000e+01 : f32
    %3 = vector.broadcast %cst_1 : f32 to vector<16x1xf32>
    %4 = arith.divf %2, %3 : vector<16x1xf32>
    %5 = vector.broadcast %4 : vector<16x1xf32> to vector<16x32xf32>
    %6 = arith.subf %0, %5 : vector<16x32xf32>
    %7 = arith.mulf %6, %6 : vector<16x32xf32>
    %cst_2 = arith.constant dense<0.000000e+00> : vector<16xf32>
    %8 = vector.multi_reduction <add>, %7, %cst_2 [1] : vector<16x32xf32> to vector<16xf32>
    %9 = vector.shape_cast %8 : vector<16xf32> to vector<16x1xf32>
    %cst_3 = arith.constant 3.200000e+01 : f32
    %10 = vector.broadcast %cst_3 : f32 to vector<16x1xf32>
    %11 = arith.divf %9, %10 : vector<16x1xf32>
    %12 = vector.broadcast %4 : vector<16x1xf32> to vector<16x32xf32>
    %13 = arith.subf %0, %12 : vector<16x32xf32>
    %cst_4 = arith.constant 9.99999974E-6 : f32
    %14 = vector.broadcast %cst_4 : f32 to vector<16x1xf32>
    %15 = arith.addf %11, %14 : vector<16x1xf32>
    %16 = math.rsqrt %15 : vector<16x1xf32>
    %17 = vector.broadcast %16 : vector<16x1xf32> to vector<16x32xf32>
    %18 = arith.mulf %13, %17 : vector<16x32xf32>
    %c0_5 = arith.constant 0 : index
    %c0_6 = arith.constant 0 : index
    %19 = vector.load %arg2[%c0_5, %c0_6] : memref<1x32xf32, #tpu.memory_space<vmem>>, vector<1x32xf32>
    %20 = vector.broadcast %19 : vector<1x32xf32> to vector<16x32xf32>
    %21 = arith.mulf %18, %20 : vector<16x32xf32>
    %c0_7 = arith.constant 0 : index
    %c0_8 = arith.constant 0 : index
    %22 = vector.load %arg3[%c0_7, %c0_8] : memref<1x32xf32, #tpu.memory_space<vmem>>, vector<1x32xf32>
    %23 = vector.broadcast %22 : vector<1x32xf32> to vector<16x32xf32>
    %24 = arith.addf %21, %23 : vector<16x32xf32>
    %25 = arith.truncf %24 : vector<16x32xf32> to vector<16x32xbf16>
    %c0_9 = arith.constant 0 : index
    %c0_10 = arith.constant 0 : index
    %26 = vector.load %arg4[%c0_9, %c0_10] : memref<16x32xbf16, #tpu.memory_space<vmem>>, vector<16x32xbf16>
    tpu.vector_store %arg4[%c0_9, %c0_10], %25 {strides = array<i32>} : memref<16x32xbf16, #tpu.memory_space<vmem>>, vector<16x32xbf16>,
    return
  }
  func.func @transform_0(%arg0: i32) -> (i32, i32) {
    %c0_i32 = arith.constant 0 : i32
    %c0_i32_0 = arith.constant 0 : i32
    return %arg0, %c0_i32 : i32, i32
  }
  func.func @transform_1(%arg0: i32) -> (i32, i32) {
    %c0_i32 = arith.constant 0 : i32
    %c0_i32_0 = arith.constant 0 : i32
    %c0_i32_1 = arith.constant 0 : i32
    return %c0_i32, %c0_i32_0 : i32, i32
  }
  func.func @transform_2(%arg0: i32) -> (i32, i32) {
    %c0_i32 = arith.constant 0 : i32
    %c0_i32_0 = arith.constant 0 : i32
    %c0_i32_1 = arith.constant 0 : i32
    return %c0_i32, %c0_i32_0 : i32, i32
  }
  func.func @transform_3(%arg0: i32) -> (i32, i32) {
    %c0_i32 = arith.constant 0 : i32
    %c0_i32_0 = arith.constant 0 : i32
    return %arg0, %c0_i32 : i32, i32
  }
}

module attributes {stable_mosaic.version = 11 : i64} {
  func.func @_linear_kernel(%arg0: i32, %arg1: i32, %arg2: i32, %arg3: memref<16x32xbf16, #tpu.memory_space<vmem>>, %arg4: memref<32x32xbf16, #tpu.memory_space<vmem>>, %arg5: memref<1x32xf32, #tpu.memory_space<vmem>>, %arg6: memref<16x32xbf16, #tpu.memory_space<vmem>>, %arg7: memref<16x32xf32, #tpu.memory_space<vmem>>, %arg8: memref<16x32xf32, #tpu.memory_space<vmem>>) attributes {dimension_semantics = [#tpu.dimension_semantics<parallel>, #tpu.dimension_semantics<parallel>, #tpu.dimension_semantics<arbitrary>], iteration_bounds = array<i64: 1, 1, 1>, scalar_prefetch = 0 : i64, scratch_operands = 1 : i64, tpu.core_type = #tpu.core_type<tc>, window_params = [{transform_indices = @transform_0, window_bounds = array<i64: 16, 32>}, {transform_indices = @transform_1, window_bounds = array<i64: 32, 32>}, {transform_indices = @transform_2, window_bounds = array<i64: 1, 32>}, {transform_indices = @transform_3, window_bounds = array<i64: 16, 32>}, {transform_indices = @transform_4, window_bounds = array<i64: 16, 32>}]} {
    %c0_i32 = arith.constant 0 : i32
    %0 = arith.cmpi eq, %arg2, %c0_i32 : i32
    %1 = arith.extui %0 : i1 to i32
    %c0_i32_0 = arith.constant 0 : i32
    %2 = arith.cmpi ne, %1, %c0_i32_0 : i32
    scf.if %2 {
      %cst_10 = arith.constant 0.000000e+00 : f32
      %12 = vector.broadcast %cst_10 : f32 to vector<16x32xf32>
      %c0_11 = arith.constant 0 : index
      %c0_12 = arith.constant 0 : index
      %13 = vector.load %arg8[%c0_11, %c0_12] : memref<16x32xf32, #tpu.memory_space<vmem>>, vector<16x32xf32>
      tpu.vector_store %arg8[%c0_11, %c0_12], %12 {strides = array<i32>} : memref<16x32xf32, #tpu.memory_space<vmem>>, vector<16x32xf32>,
    } else {
    }
    %c0 = arith.constant 0 : index
    %c0_1 = arith.constant 0 : index
    %3 = vector.load %arg8[%c0, %c0_1] : memref<16x32xf32, #tpu.memory_space<vmem>>, vector<16x32xf32>
    %c0_2 = arith.constant 0 : index
    %c0_3 = arith.constant 0 : index
    %4 = vector.load %arg3[%c0_2, %c0_3] : memref<16x32xbf16, #tpu.memory_space<vmem>>, vector<16x32xbf16>
    %c0_4 = arith.constant 0 : index
    %c0_5 = arith.constant 0 : index
    %5 = vector.load %arg4[%c0_4, %c0_5] : memref<32x32xbf16, #tpu.memory_space<vmem>>, vector<32x32xbf16>
    %cst = arith.constant dense<0.000000e+00> : vector<16x32xf32>
    %6 = tpu.matmul %4, %5, %cst {dimension_numbers = #tpu.dot_dimension_numbers<[1], [1], [0], [0], [0, 0, 1, 0], [], []>} : vector<16x32xbf16>, vector<32x32xbf16>, vector<16x32xf32> -> vector<16x32xf32>
    %7 = arith.addf %3, %6 : vector<16x32xf32>
    %c0_6 = arith.constant 0 : index
    %c0_7 = arith.constant 0 : index
    %8 = vector.load %arg8[%c0_6, %c0_7] : memref<16x32xf32, #tpu.memory_space<vmem>>, vector<16x32xf32>
    tpu.vector_store %arg8[%c0_6, %c0_7], %7 {strides = array<i32>} : memref<16x32xf32, #tpu.memory_space<vmem>>, vector<16x32xf32>,
    %c0_i32_8 = arith.constant 0 : i32
    %9 = arith.cmpi eq, %arg2, %c0_i32_8 : i32
    %10 = arith.extui %9 : i1 to i32
    %c0_i32_9 = arith.constant 0 : i32
    %11 = arith.cmpi ne, %10, %c0_i32_9 : i32
    scf.if %11 {
      %c0_10 = arith.constant 0 : index
      %c0_11 = arith.constant 0 : index
      %12 = vector.load %arg8[%c0_10, %c0_11] : memref<16x32xf32, #tpu.memory_space<vmem>>, vector<16x32xf32>
      %c0_12 = arith.constant 0 : index
      %c0_13 = arith.constant 0 : index
      %13 = vector.load %arg5[%c0_12, %c0_13] : memref<1x32xf32, #tpu.memory_space<vmem>>, vector<1x32xf32>
      %14 = vector.broadcast %13 : vector<1x32xf32> to vector<16x32xf32>
      %15 = arith.addf %12, %14 : vector<16x32xf32>
      %c0_14 = arith.constant 0 : index
      %c0_15 = arith.constant 0 : index
      %16 = vector.load %arg6[%c0_14, %c0_15] : memref<16x32xbf16, #tpu.memory_space<vmem>>, vector<16x32xbf16>
      %17 = arith.extf %16 : vector<16x32xbf16> to vector<16x32xf32>
      %cst_16 = arith.constant 2.000000e+00 : f32
      %18 = vector.broadcast %cst_16 : f32 to vector<16x32xf32>
      %19 = arith.mulf %18, %17 : vector<16x32xf32>
      %20 = arith.addf %15, %19 : vector<16x32xf32>
      %c0_17 = arith.constant 0 : index
      %c0_18 = arith.constant 0 : index
      %21 = vector.load %arg7[%c0_17, %c0_18] : memref<16x32xf32, #tpu.memory_space<vmem>>, vector<16x32xf32>
      tpu.vector_store %arg7[%c0_17, %c0_18], %20 {strides = array<i32>} : memref<16x32xf32, #tpu.memory_space<vmem>>, vector<16x32xf32>,
    } else {
    }
    return
  }
  func.func @transform_0(%arg0: i32, %arg1: i32, %arg2: i32) -> (i32, i32) {
    %c0_i32 = arith.constant 0 : i32
    return %arg0, %arg2 : i32, i32
  }
  func.func @transform_1(%arg0: i32, %arg1: i32, %arg2: i32) -> (i32, i32) {
    %c0_i32 = arith.constant 0 : i32
    return %arg1, %arg2 : i32, i32
  }
  func.func @transform_2(%arg0: i32, %arg1: i32, %arg2: i32) -> (i32, i32) {
    %c0_i32 = arith.constant 0 : i32
    %c0_i32_0 = arith.constant 0 : i32
    return %c0_i32, %arg1 : i32, i32
  }
  func.func @transform_3(%arg0: i32, %arg1: i32, %arg2: i32) -> (i32, i32) {
    %c0_i32 = arith.constant 0 : i32
    return %arg0, %arg1 : i32, i32
  }
  func.func @transform_4(%arg0: i32, %arg1: i32, %arg2: i32) -> (i32, i32) {
    %c0_i32 = arith.constant 0 : i32
    return %arg0, %arg1 : i32, i32
  }
}

module attributes {stable_mosaic.version = 11 : i64} {
  func.func @_flash_attn_kernel(%arg0: i32, %arg1: i32, %arg2: i32, %arg3: i32, %arg4: memref<1x1x8x8xbf16, #tpu.memory_space<vmem>>, %arg5: memref<1x1x12x8xbf16, #tpu.memory_space<vmem>>, %arg6: memref<1x1x12x8xbf16, #tpu.memory_space<vmem>>, %arg7: memref<1x1x8x12xbf16, #tpu.memory_space<vmem>>, %arg8: memref<1x1x8x8xbf16, #tpu.memory_space<vmem>>, %arg9: memref<8x1xf32, #tpu.memory_space<vmem>>, %arg10: memref<8x1xf32, #tpu.memory_space<vmem>>, %arg11: memref<8x8xf32, #tpu.memory_space<vmem>>) attributes {dimension_semantics = [#tpu.dimension_semantics<parallel>, #tpu.dimension_semantics<parallel>, #tpu.dimension_semantics<parallel>, #tpu.dimension_semantics<arbitrary>], iteration_bounds = array<i64: 2, 4, 1, 1>, scalar_prefetch = 0 : i64, scratch_operands = 3 : i64, tpu.core_type = #tpu.core_type<tc>, window_params = [{transform_indices = @transform_0, window_bounds = array<i64: 1, 1, 8, 8>}, {transform_indices = @transform_1, window_bounds = array<i64: 1, 1, 12, 8>}, {transform_indices = @transform_2, window_bounds = array<i64: 1, 1, 12, 8>}, {transform_indices = @transform_3, window_bounds = array<i64: 1, 1, 8, 12>}, {transform_indices = @transform_4, window_bounds = array<i64: 1, 1, 8, 8>}]} {
    %c0_i32 = arith.constant 0 : i32
    %0 = arith.cmpi eq, %arg3, %c0_i32 : i32
    %1 = arith.extui %0 : i1 to i32
    %c0_i32_0 = arith.constant 0 : i32
    %2 = arith.cmpi ne, %1, %c0_i32_0 : i32
    scf.if %2 {
      %cst_36 = arith.constant 0xFF800000 : f32
      %44 = vector.broadcast %cst_36 : f32 to vector<8x1xf32>
      %c0_37 = arith.constant 0 : index
      %c0_38 = arith.constant 0 : index
      %45 = vector.load %arg9[%c0_37, %c0_38] : memref<8x1xf32, #tpu.memory_space<vmem>>, vector<8x1xf32>
      tpu.vector_store %arg9[%c0_37, %c0_38], %44 {strides = array<i32>} : memref<8x1xf32, #tpu.memory_space<vmem>>, vector<8x1xf32>,
      %cst_39 = arith.constant 0.000000e+00 : f32
      %46 = vector.broadcast %cst_39 : f32 to vector<8x1xf32>
      %c0_40 = arith.constant 0 : index
      %c0_41 = arith.constant 0 : index
      %47 = vector.load %arg10[%c0_40, %c0_41] : memref<8x1xf32, #tpu.memory_space<vmem>>, vector<8x1xf32>
      tpu.vector_store %arg10[%c0_40, %c0_41], %46 {strides = array<i32>} : memref<8x1xf32, #tpu.memory_space<vmem>>, vector<8x1xf32>,
      %cst_42 = arith.constant 0.000000e+00 : f32
      %48 = vector.broadcast %cst_42 : f32 to vector<8x8xf32>
      %c0_43 = arith.constant 0 : index
      %c0_44 = arith.constant 0 : index
      %49 = vector.load %arg11[%c0_43, %c0_44] : memref<8x8xf32, #tpu.memory_space<vmem>>, vector<8x8xf32>
      tpu.vector_store %arg11[%c0_43, %c0_44], %48 {strides = array<i32>} : memref<8x8xf32, #tpu.memory_space<vmem>>, vector<8x8xf32>,
    } else {
    }
    %c0 = arith.constant 0 : index
    %c0_1 = arith.constant 0 : index
    %c0_2 = arith.constant 0 : index
    %c0_3 = arith.constant 0 : index
    %3 = vector.load %arg4[%c0, %c0_1, %c0_2, %c0_3] : memref<1x1x8x8xbf16, #tpu.memory_space<vmem>>, vector<1x1x8x8xbf16>
    %4 = vector.shape_cast %3 : vector<1x1x8x8xbf16> to vector<8x8xbf16>
    %c0_4 = arith.constant 0 : index
    %c0_5 = arith.constant 0 : index
    %c0_6 = arith.constant 0 : index
    %c0_7 = arith.constant 0 : index
    %5 = vector.load %arg5[%c0_4, %c0_5, %c0_6, %c0_7] : memref<1x1x12x8xbf16, #tpu.memory_space<vmem>>, vector<1x1x12x8xbf16>
    %6 = vector.shape_cast %5 : vector<1x1x12x8xbf16> to vector<12x8xbf16>
    %cst = arith.constant dense<0.000000e+00> : vector<8x12xf32>
    %7 = tpu.matmul %4, %6, %cst {dimension_numbers = #tpu.dot_dimension_numbers<[1], [1], [0], [0], [0, 0, 1, 0], [], []>} : vector<8x8xbf16>, vector<12x8xbf16>, vector<8x12xf32> -> vector<8x12xf32>
    %cst_8 = arith.constant 0.353553385 : f32
    %8 = vector.broadcast %cst_8 : f32 to vector<8x12xf32>
    %9 = arith.mulf %7, %8 : vector<8x12xf32>
    %c0_9 = arith.constant 0 : index
    %c0_10 = arith.constant 0 : index
    %c0_11 = arith.constant 0 : index
    %c0_12 = arith.constant 0 : index
    %10 = vector.load %arg7[%c0_9, %c0_10, %c0_11, %c0_12] : memref<1x1x8x12xbf16, #tpu.memory_space<vmem>>, vector<1x1x8x12xbf16>
    %11 = vector.shape_cast %10 : vector<1x1x8x12xbf16> to vector<8x12xbf16>
    %cst_13 = arith.constant 5.000000e-01 : bf16
    %12 = vector.broadcast %cst_13 : bf16 to vector<8x12xbf16>
    %13 = arith.cmpf ogt, %11, %12 : vector<8x12xbf16>
    %cst_14 = arith.constant -1.000000e+04 : f32
    %14 = vector.broadcast %cst_14 : f32 to vector<8x12xf32>
    %15 = arith.select %13, %14, %9 : vector<8x12xi1>, vector<8x12xf32>
    %c0_15 = arith.constant 0 : index
    %c0_16 = arith.constant 0 : index
    %16 = vector.load %arg9[%c0_15, %c0_16] : memref<8x1xf32, #tpu.memory_space<vmem>>, vector<8x1xf32>
    %cst_17 = arith.constant dense<0xFF800000> : vector<8xf32>
    %17 = vector.multi_reduction <maximumf>, %15, %cst_17 [1] : vector<8x12xf32> to vector<8xf32>
    %18 = vector.shape_cast %17 : vector<8xf32> to vector<8x1xf32>
    %19 = arith.maximumf %16, %18 : vector<8x1xf32>
    %20 = arith.subf %16, %19 : vector<8x1xf32>
    %21 = math.exp %20 : vector<8x1xf32>
    %22 = vector.broadcast %19 : vector<8x1xf32> to vector<8x12xf32>
    %23 = arith.subf %15, %22 : vector<8x12xf32>
    %24 = math.exp %23 : vector<8x12xf32>
    %c0_18 = arith.constant 0 : index
    %c0_19 = arith.constant 0 : index
    %25 = vector.load %arg10[%c0_18, %c0_19] : memref<8x1xf32, #tpu.memory_space<vmem>>, vector<8x1xf32>
    %26 = arith.mulf %21, %25 : vector<8x1xf32>
    %cst_20 = arith.constant dense<0.000000e+00> : vector<8xf32>
    %27 = vector.multi_reduction <add>, %24, %cst_20 [1] : vector<8x12xf32> to vector<8xf32>
    %28 = vector.shape_cast %27 : vector<8xf32> to vector<8x1xf32>
    %29 = arith.addf %26, %28 : vector<8x1xf32>
    %c0_21 = arith.constant 0 : index
    %c0_22 = arith.constant 0 : index
    %30 = vector.load %arg10[%c0_21, %c0_22] : memref<8x1xf32, #tpu.memory_space<vmem>>, vector<8x1xf32>
    tpu.vector_store %arg10[%c0_21, %c0_22], %29 {strides = array<i32>} : memref<8x1xf32, #tpu.memory_space<vmem>>, vector<8x1xf32>,
    %c0_23 = arith.constant 0 : index
    %c0_24 = arith.constant 0 : index
    %31 = vector.load %arg11[%c0_23, %c0_24] : memref<8x8xf32, #tpu.memory_space<vmem>>, vector<8x8xf32>
    %32 = vector.broadcast %21 : vector<8x1xf32> to vector<8x8xf32>
    %33 = arith.mulf %32, %31 : vector<8x8xf32>
    %34 = arith.truncf %24 : vector<8x12xf32> to vector<8x12xbf16>
    %c0_25 = arith.constant 0 : index
    %c0_26 = arith.constant 0 : index
    %c0_27 = arith.constant 0 : index
    %c0_28 = arith.constant 0 : index
    %35 = vector.load %arg6[%c0_25, %c0_26, %c0_27, %c0_28] : memref<1x1x12x8xbf16, #tpu.memory_space<vmem>>, vector<1x1x12x8xbf16>
    %36 = vector.shape_cast %35 : vector<1x1x12x8xbf16> to vector<12x8xbf16>
    %cst_29 = arith.constant dense<0.000000e+00> : vector<8x8xf32>
    %37 = tpu.matmul %34, %36, %cst_29 {dimension_numbers = #tpu.dot_dimension_numbers<[1], [0], [0], [1], [0, 0, 1, 1], [], []>} : vector<8x12xbf16>, vector<12x8xbf16>, vector<8x8xf32> -> vector<8x8xf32>
    %38 = arith.addf %33, %37 : vector<8x8xf32>
    %c0_30 = arith.constant 0 : index
    %c0_31 = arith.constant 0 : index
    %39 = vector.load %arg11[%c0_30, %c0_31] : memref<8x8xf32, #tpu.memory_space<vmem>>, vector<8x8xf32>
    tpu.vector_store %arg11[%c0_30, %c0_31], %38 {strides = array<i32>} : memref<8x8xf32, #tpu.memory_space<vmem>>, vector<8x8xf32>,
    %c0_32 = arith.constant 0 : index
    %c0_33 = arith.constant 0 : index
    %40 = vector.load %arg9[%c0_32, %c0_33] : memref<8x1xf32, #tpu.memory_space<vmem>>, vector<8x1xf32>
    tpu.vector_store %arg9[%c0_32, %c0_33], %19 {strides = array<i32>} : memref<8x1xf32, #tpu.memory_space<vmem>>, vector<8x1xf32>,
    %c0_i32_34 = arith.constant 0 : i32
    %41 = arith.cmpi eq, %arg3, %c0_i32_34 : i32
    %42 = arith.extui %41 : i1 to i32
    %c0_i32_35 = arith.constant 0 : i32
    %43 = arith.cmpi ne, %42, %c0_i32_35 : i32
    scf.if %43 {
      %c0_36 = arith.constant 0 : index
      %c0_37 = arith.constant 0 : index
      %44 = vector.load %arg10[%c0_36, %c0_37] : memref<8x1xf32, #tpu.memory_space<vmem>>, vector<8x1xf32>
      %45 = tpu.reciprocal %44 {approx = true} : vector<8x1xf32> -> vector<8x1xf32>
      %c0_38 = arith.constant 0 : index
      %c0_39 = arith.constant 0 : index
      %46 = vector.load %arg11[%c0_38, %c0_39] : memref<8x8xf32, #tpu.memory_space<vmem>>, vector<8x8xf32>
      %47 = vector.broadcast %45 : vector<8x1xf32> to vector<8x8xf32>
      %48 = arith.mulf %46, %47 : vector<8x8xf32>
      %49 = arith.truncf %48 : vector<8x8xf32> to vector<8x8xbf16>
      %c0_40 = arith.constant 0 : index
      %c0_41 = arith.constant 0 : index
      %c0_42 = arith.constant 0 : index
      %c0_43 = arith.constant 0 : index
      %50 = vector.load %arg8[%c0_40, %c0_41, %c0_42, %c0_43] : memref<1x1x8x8xbf16, #tpu.memory_space<vmem>>, vector<1x1x8x8xbf16>
      %51 = vector.shape_cast %50 : vector<1x1x8x8xbf16> to vector<8x8xbf16>
      %52 = vector.shape_cast %49 : vector<8x8xbf16> to vector<1x1x8x8xbf16>
      tpu.vector_store %arg8[%c0_40, %c0_41, %c0_42, %c0_43], %52 {strides = array<i32>} : memref<1x1x8x8xbf16, #tpu.memory_space<vmem>>, vector<1x1x8x8xbf16>,
    } else {
    }
    return
  }
  func.func @transform_0(%arg0: i32, %arg1: i32, %arg2: i32, %arg3: i32) -> (i32, i32, i32, i32) {
    %c0_i32 = arith.constant 0 : i32
    %c0_i32_0 = arith.constant 0 : i32
    return %arg0, %arg1, %arg2, %c0_i32 : i32, i32, i32, i32
  }
  func.func @transform_1(%arg0: i32, %arg1: i32, %arg2: i32, %arg3: i32) -> (i32, i32, i32, i32) {
    %c0_i32 = arith.constant 0 : i32
    %c0_i32_0 = arith.constant 0 : i32
    return %arg0, %arg1, %arg3, %c0_i32 : i32, i32, i32, i32
  }
  func.func @transform_2(%arg0: i32, %arg1: i32, %arg2: i32, %arg3: i32) -> (i32, i32, i32, i32) {
    %c0_i32 = arith.constant 0 : i32
    %c0_i32_0 = arith.constant 0 : i32
    return %arg0, %arg1, %arg3, %c0_i32 : i32, i32, i32, i32
  }
  func.func @transform_3(%arg0: i32, %arg1: i32, %arg2: i32, %arg3: i32) -> (i32, i32, i32, i32) {
    %c0_i32 = arith.constant 0 : i32
    %c0_i32_0 = arith.constant 0 : i32
    return %arg0, %c0_i32, %arg2, %arg3 : i32, i32, i32, i32
  }
  func.func @transform_4(%arg0: i32, %arg1: i32, %arg2: i32, %arg3: i32) -> (i32, i32, i32, i32) {
    %c0_i32 = arith.constant 0 : i32
    %c0_i32_0 = arith.constant 0 : i32
    return %arg0, %arg1, %arg2, %c0_i32 : i32, i32, i32, i32
  }
}

module attributes {stable_mosaic.version = 11 : i64} {
  func.func @_linear_kernel(%arg0: i32, %arg1: i32, %arg2: i32, %arg3: memref<16x32xbf16, #tpu.memory_space<vmem>>, %arg4: memref<128x32xbf16, #tpu.memory_space<vmem>>, %arg5: memref<1x128xf32, #tpu.memory_space<vmem>>, %arg6: memref<16x128xbf16, #tpu.memory_space<vmem>>, %arg7: memref<16x128xf32, #tpu.memory_space<vmem>>) attributes {dimension_semantics = [#tpu.dimension_semantics<parallel>, #tpu.dimension_semantics<parallel>, #tpu.dimension_semantics<arbitrary>], iteration_bounds = array<i64: 1, 1, 1>, scalar_prefetch = 0 : i64, scratch_operands = 1 : i64, tpu.core_type = #tpu.core_type<tc>, window_params = [{transform_indices = @transform_0, window_bounds = array<i64: 16, 32>}, {transform_indices = @transform_1, window_bounds = array<i64: 128, 32>}, {transform_indices = @transform_2, window_bounds = array<i64: 1, 128>}, {transform_indices = @transform_3, window_bounds = array<i64: 16, 128>}]} {
    %c0_i32 = arith.constant 0 : i32
    %0 = arith.cmpi eq, %arg2, %c0_i32 : i32
    %1 = arith.extui %0 : i1 to i32
    %c0_i32_0 = arith.constant 0 : i32
    %2 = arith.cmpi ne, %1, %c0_i32_0 : i32
    scf.if %2 {
      %cst_10 = arith.constant 0.000000e+00 : f32
      %12 = vector.broadcast %cst_10 : f32 to vector<16x128xf32>
      %c0_11 = arith.constant 0 : index
      %c0_12 = arith.constant 0 : index
      %13 = vector.load %arg7[%c0_11, %c0_12] : memref<16x128xf32, #tpu.memory_space<vmem>>, vector<16x128xf32>
      tpu.vector_store %arg7[%c0_11, %c0_12], %12 {strides = array<i32>} : memref<16x128xf32, #tpu.memory_space<vmem>>, vector<16x128xf32>,
    } else {
    }
    %c0 = arith.constant 0 : index
    %c0_1 = arith.constant 0 : index
    %3 = vector.load %arg7[%c0, %c0_1] : memref<16x128xf32, #tpu.memory_space<vmem>>, vector<16x128xf32>
    %c0_2 = arith.constant 0 : index
    %c0_3 = arith.constant 0 : index
    %4 = vector.load %arg3[%c0_2, %c0_3] : memref<16x32xbf16, #tpu.memory_space<vmem>>, vector<16x32xbf16>
    %c0_4 = arith.constant 0 : index
    %c0_5 = arith.constant 0 : index
    %5 = vector.load %arg4[%c0_4, %c0_5] : memref<128x32xbf16, #tpu.memory_space<vmem>>, vector<128x32xbf16>
    %cst = arith.constant dense<0.000000e+00> : vector<16x128xf32>
    %6 = tpu.matmul %4, %5, %cst {dimension_numbers = #tpu.dot_dimension_numbers<[1], [1], [0], [0], [0, 0, 1, 0], [], []>} : vector<16x32xbf16>, vector<128x32xbf16>, vector<16x128xf32> -> vector<16x128xf32>
    %7 = arith.addf %3, %6 : vector<16x128xf32>
    %c0_6 = arith.constant 0 : index
    %c0_7 = arith.constant 0 : index
    %8 = vector.load %arg7[%c0_6, %c0_7] : memref<16x128xf32, #tpu.memory_space<vmem>>, vector<16x128xf32>
    tpu.vector_store %arg7[%c0_6, %c0_7], %7 {strides = array<i32>} : memref<16x128xf32, #tpu.memory_space<vmem>>, vector<16x128xf32>,
    %c0_i32_8 = arith.constant 0 : i32
    %9 = arith.cmpi eq, %arg2, %c0_i32_8 : i32
    %10 = arith.extui %9 : i1 to i32
    %c0_i32_9 = arith.constant 0 : i32
    %11 = arith.cmpi ne, %10, %c0_i32_9 : i32
    scf.if %11 {
      %c0_10 = arith.constant 0 : index
      %c0_11 = arith.constant 0 : index
      %12 = vector.load %arg7[%c0_10, %c0_11] : memref<16x128xf32, #tpu.memory_space<vmem>>, vector<16x128xf32>
      %c0_12 = arith.constant 0 : index
      %c0_13 = arith.constant 0 : index
      %13 = vector.load %arg5[%c0_12, %c0_13] : memref<1x128xf32, #tpu.memory_space<vmem>>, vector<1x128xf32>
      %14 = vector.broadcast %13 : vector<1x128xf32> to vector<16x128xf32>
      %15 = arith.addf %12, %14 : vector<16x128xf32>
      %cst_14 = arith.constant 5.000000e-01 : f32
      %16 = vector.broadcast %cst_14 : f32 to vector<16x128xf32>
      %17 = arith.mulf %16, %15 : vector<16x128xf32>
      %cst_15 = arith.constant 4.471500e-02 : f32
      %18 = vector.broadcast %cst_15 : f32 to vector<16x128xf32>
      %19 = arith.mulf %18, %15 : vector<16x128xf32>
      %20 = arith.mulf %19, %15 : vector<16x128xf32>
      %21 = arith.mulf %20, %15 : vector<16x128xf32>
      %22 = arith.addf %15, %21 : vector<16x128xf32>
      %cst_16 = arith.constant 0.797884583 : f32
      %23 = vector.broadcast %cst_16 : f32 to vector<16x128xf32>
      %24 = arith.mulf %23, %22 : vector<16x128xf32>
      %25 = math.tanh %24 : vector<16x128xf32>
      %cst_17 = arith.constant 1.000000e+00 : f32
      %26 = vector.broadcast %cst_17 : f32 to vector<16x128xf32>
      %27 = arith.addf %26, %25 : vector<16x128xf32>
      %28 = arith.mulf %17, %27 : vector<16x128xf32>
      %29 = arith.truncf %28 : vector<16x128xf32> to vector<16x128xbf16>
      %c0_18 = arith.constant 0 : index
      %c0_19 = arith.constant 0 : index
      %30 = vector.load %arg6[%c0_18, %c0_19] : memref<16x128xbf16, #tpu.memory_space<vmem>>, vector<16x128xbf16>
      tpu.vector_store %arg6[%c0_18, %c0_19], %29 {strides = array<i32>} : memref<16x128xbf16, #tpu.memory_space<vmem>>, vector<16x128xbf16>,
    } else {
    }
    return
  }
  func.func @transform_0(%arg0: i32, %arg1: i32, %arg2: i32) -> (i32, i32) {
    %c0_i32 = arith.constant 0 : i32
    return %arg0, %arg2 : i32, i32
  }
  func.func @transform_1(%arg0: i32, %arg1: i32, %arg2: i32) -> (i32, i32) {
    %c0_i32 = arith.constant 0 : i32
    return %arg1, %arg2 : i32, i32
  }
  func.func @transform_2(%arg0: i32, %arg1: i32, %arg2: i32) -> (i32, i32) {
    %c0_i32 = arith.constant 0 : i32
    %c0_i32_0 = arith.constant 0 : i32
    return %c0_i32, %arg1 : i32, i32
  }
  func.func @transform_3(%arg0: i32, %arg1: i32, %arg2: i32) -> (i32, i32) {
    %c0_i32 = arith.constant 0 : i32
    return %arg0, %arg1 : i32, i32
  }
}

module attributes {stable_mosaic.version = 11 : i64} {
  func.func @_linear_kernel(%arg0: i32, %arg1: i32, %arg2: i32, %arg3: memref<16x128xbf16, #tpu.memory_space<vmem>>, %arg4: memref<32x128xbf16, #tpu.memory_space<vmem>>, %arg5: memref<1x32xf32, #tpu.memory_space<vmem>>, %arg6: memref<16x32xbf16, #tpu.memory_space<vmem>>, %arg7: memref<16x32xf32, #tpu.memory_space<vmem>>, %arg8: memref<16x32xf32, #tpu.memory_space<vmem>>) attributes {dimension_semantics = [#tpu.dimension_semantics<parallel>, #tpu.dimension_semantics<parallel>, #tpu.dimension_semantics<arbitrary>], iteration_bounds = array<i64: 1, 1, 1>, scalar_prefetch = 0 : i64, scratch_operands = 1 : i64, tpu.core_type = #tpu.core_type<tc>, window_params = [{transform_indices = @transform_0, window_bounds = array<i64: 16, 128>}, {transform_indices = @transform_1, window_bounds = array<i64: 32, 128>}, {transform_indices = @transform_2, window_bounds = array<i64: 1, 32>}, {transform_indices = @transform_3, window_bounds = array<i64: 16, 32>}, {transform_indices = @transform_4, window_bounds = array<i64: 16, 32>}]} {
    %c0_i32 = arith.constant 0 : i32
    %0 = arith.cmpi eq, %arg2, %c0_i32 : i32
    %1 = arith.extui %0 : i1 to i32
    %c0_i32_0 = arith.constant 0 : i32
    %2 = arith.cmpi ne, %1, %c0_i32_0 : i32
    scf.if %2 {
      %cst_10 = arith.constant 0.000000e+00 : f32
      %12 = vector.broadcast %cst_10 : f32 to vector<16x32xf32>
      %c0_11 = arith.constant 0 : index
      %c0_12 = arith.constant 0 : index
      %13 = vector.load %arg8[%c0_11, %c0_12] : memref<16x32xf32, #tpu.memory_space<vmem>>, vector<16x32xf32>
      tpu.vector_store %arg8[%c0_11, %c0_12], %12 {strides = array<i32>} : memref<16x32xf32, #tpu.memory_space<vmem>>, vector<16x32xf32>,
    } else {
    }
    %c0 = arith.constant 0 : index
    %c0_1 = arith.constant 0 : index
    %3 = vector.load %arg8[%c0, %c0_1] : memref<16x32xf32, #tpu.memory_space<vmem>>, vector<16x32xf32>
    %c0_2 = arith.constant 0 : index
    %c0_3 = arith.constant 0 : index
    %4 = vector.load %arg3[%c0_2, %c0_3] : memref<16x128xbf16, #tpu.memory_space<vmem>>, vector<16x128xbf16>
    %c0_4 = arith.constant 0 : index
    %c0_5 = arith.constant 0 : index
    %5 = vector.load %arg4[%c0_4, %c0_5] : memref<32x128xbf16, #tpu.memory_space<vmem>>, vector<32x128xbf16>
    %cst = arith.constant dense<0.000000e+00> : vector<16x32xf32>
    %6 = tpu.matmul %4, %5, %cst {dimension_numbers = #tpu.dot_dimension_numbers<[1], [1], [0], [0], [0, 0, 1, 0], [], []>} : vector<16x128xbf16>, vector<32x128xbf16>, vector<16x32xf32> -> vector<16x32xf32>
    %7 = arith.addf %3, %6 : vector<16x32xf32>
    %c0_6 = arith.constant 0 : index
    %c0_7 = arith.constant 0 : index
    %8 = vector.load %arg8[%c0_6, %c0_7] : memref<16x32xf32, #tpu.memory_space<vmem>>, vector<16x32xf32>
    tpu.vector_store %arg8[%c0_6, %c0_7], %7 {strides = array<i32>} : memref<16x32xf32, #tpu.memory_space<vmem>>, vector<16x32xf32>,
    %c0_i32_8 = arith.constant 0 : i32
    %9 = arith.cmpi eq, %arg2, %c0_i32_8 : i32
    %10 = arith.extui %9 : i1 to i32
    %c0_i32_9 = arith.constant 0 : i32
    %11 = arith.cmpi ne, %10, %c0_i32_9 : i32
    scf.if %11 {
      %c0_10 = arith.constant 0 : index
      %c0_11 = arith.constant 0 : index
      %12 = vector.load %arg8[%c0_10, %c0_11] : memref<16x32xf32, #tpu.memory_space<vmem>>, vector<16x32xf32>
      %c0_12 = arith.constant 0 : index
      %c0_13 = arith.constant 0 : index
      %13 = vector.load %arg5[%c0_12, %c0_13] : memref<1x32xf32, #tpu.memory_space<vmem>>, vector<1x32xf32>
      %14 = vector.broadcast %13 : vector<1x32xf32> to vector<16x32xf32>
      %15 = arith.addf %12, %14 : vector<16x32xf32>
      %c0_14 = arith.constant 0 : index
      %c0_15 = arith.constant 0 : index
      %16 = vector.load %arg6[%c0_14, %c0_15] : memref<16x32xbf16, #tpu.memory_space<vmem>>, vector<16x32xbf16>
      %17 = arith.extf %16 : vector<16x32xbf16> to vector<16x32xf32>
      %cst_16 = arith.constant 2.000000e+00 : f32
      %18 = vector.broadcast %cst_16 : f32 to vector<16x32xf32>
      %19 = arith.mulf %18, %17 : vector<16x32xf32>
      %20 = arith.addf %15, %19 : vector<16x32xf32>
      %c0_17 = arith.constant 0 : index
      %c0_18 = arith.constant 0 : index
      %21 = vector.load %arg7[%c0_17, %c0_18] : memref<16x32xf32, #tpu.memory_space<vmem>>, vector<16x32xf32>
      tpu.vector_store %arg7[%c0_17, %c0_18], %20 {strides = array<i32>} : memref<16x32xf32, #tpu.memory_space<vmem>>, vector<16x32xf32>,
    } else {
    }
    return
  }
  func.func @transform_0(%arg0: i32, %arg1: i32, %arg2: i32) -> (i32, i32) {
    %c0_i32 = arith.constant 0 : i32
    return %arg0, %arg2 : i32, i32
  }
  func.func @transform_1(%arg0: i32, %arg1: i32, %arg2: i32) -> (i32, i32) {
    %c0_i32 = arith.constant 0 : i32
    return %arg1, %arg2 : i32, i32
  }
  func.func @transform_2(%arg0: i32, %arg1: i32, %arg2: i32) -> (i32, i32) {
    %c0_i32 = arith.constant 0 : i32
    %c0_i32_0 = arith.constant 0 : i32
    return %c0_i32, %arg1 : i32, i32
  }
  func.func @transform_3(%arg0: i32, %arg1: i32, %arg2: i32) -> (i32, i32) {
    %c0_i32 = arith.constant 0 : i32
    return %arg0, %arg1 : i32, i32
  }
  func.func @transform_4(%arg0: i32, %arg1: i32, %arg2: i32) -> (i32, i32) {
    %c0_i32 = arith.constant 0 : i32
    return %arg0, %arg1 : i32, i32
  }
}

module attributes {stable_mosaic.version = 11 : i64} {
  func.func @_layernorm_kernel(%arg0: i32, %arg1: memref<1x32xf32, #tpu.memory_space<vmem>>, %arg2: memref<1x32xf32, #tpu.memory_space<vmem>>, %arg3: memref<1x32xf32, #tpu.memory_space<vmem>>, %arg4: memref<1x32xf32, #tpu.memory_space<vmem>>) attributes {dimension_semantics = [#tpu.dimension_semantics<parallel>], iteration_bounds = array<i64: 1>, scalar_prefetch = 0 : i64, scratch_operands = 0 : i64, tpu.core_type = #tpu.core_type<tc>, window_params = [{transform_indices = @transform_0, window_bounds = array<i64: 1, 32>}, {pipeline_mode = #tpu.pipeline_mode<synchronous>, transform_indices = @transform_1, window_bounds = array<i64: 1, 32>}, {pipeline_mode = #tpu.pipeline_mode<synchronous>, transform_indices = @transform_2, window_bounds = array<i64: 1, 32>}, {transform_indices = @transform_3, window_bounds = array<i64: 1, 32>}]} {
    %c0 = arith.constant 0 : index
    %c0_0 = arith.constant 0 : index
    %0 = vector.load %arg1[%c0, %c0_0] : memref<1x32xf32, #tpu.memory_space<vmem>>, vector<1x32xf32>
    %cst = arith.constant dense<0.000000e+00> : vector<1xf32>
    %1 = vector.multi_reduction <add>, %0, %cst [1] : vector<1x32xf32> to vector<1xf32>
    %2 = vector.shape_cast %1 : vector<1xf32> to vector<1x1xf32>
    %cst_1 = arith.constant 3.200000e+01 : f32
    %3 = vector.broadcast %cst_1 : f32 to vector<1x1xf32>
    %4 = arith.divf %2, %3 : vector<1x1xf32>
    %5 = vector.broadcast %4 : vector<1x1xf32> to vector<1x32xf32>
    %6 = arith.subf %0, %5 : vector<1x32xf32>
    %7 = arith.mulf %6, %6 : vector<1x32xf32>
    %cst_2 = arith.constant dense<0.000000e+00> : vector<1xf32>
    %8 = vector.multi_reduction <add>, %7, %cst_2 [1] : vector<1x32xf32> to vector<1xf32>
    %9 = vector.shape_cast %8 : vector<1xf32> to vector<1x1xf32>
    %cst_3 = arith.constant 3.200000e+01 : f32
    %10 = vector.broadcast %cst_3 : f32 to vector<1x1xf32>
    %11 = arith.divf %9, %10 : vector<1x1xf32>
    %12 = vector.broadcast %4 : vector<1x1xf32> to vector<1x32xf32>
    %13 = arith.subf %0, %12 : vector<1x32xf32>
    %cst_4 = arith.constant 9.99999974E-6 : f32
    %14 = vector.broadcast %cst_4 : f32 to vector<1x1xf32>
    %15 = arith.addf %11, %14 : vector<1x1xf32>
    %16 = math.rsqrt %15 : vector<1x1xf32>
    %17 = vector.broadcast %16 : vector<1x1xf32> to vector<1x32xf32>
    %18 = arith.mulf %13, %17 : vector<1x32xf32>
    %c0_5 = arith.constant 0 : index
    %c0_6 = arith.constant 0 : index
    %19 = vector.load %arg2[%c0_5, %c0_6] : memref<1x32xf32, #tpu.memory_space<vmem>>, vector<1x32xf32>
    %20 = arith.mulf %18, %19 : vector<1x32xf32>
    %c0_7 = arith.constant 0 : index
    %c0_8 = arith.constant 0 : index
    %21 = vector.load %arg3[%c0_7, %c0_8] : memref<1x32xf32, #tpu.memory_space<vmem>>, vector<1x32xf32>
    %22 = arith.addf %20, %21 : vector<1x32xf32>
    %c0_9 = arith.constant 0 : index
    %c0_10 = arith.constant 0 : index
    %23 = vector.load %arg4[%c0_9, %c0_10] : memref<1x32xf32, #tpu.memory_space<vmem>>, vector<1x32xf32>
    tpu.vector_store %arg4[%c0_9, %c0_10], %22 {strides = array<i32>} : memref<1x32xf32, #tpu.memory_space<vmem>>, vector<1x32xf32>,
    return
  }
  func.func @transform_0(%arg0: i32) -> (i32, i32) {
    %c0_i32 = arith.constant 0 : i32
    %c0_i32_0 = arith.constant 0 : i32
    return %arg0, %c0_i32 : i32, i32
  }
  func.func @transform_1(%arg0: i32) -> (i32, i32) {
    %c0_i32 = arith.constant 0 : i32
    %c0_i32_0 = arith.constant 0 : i32
    %c0_i32_1 = arith.constant 0 : i32
    return %c0_i32, %c0_i32_0 : i32, i32
  }
  func.func @transform_2(%arg0: i32) -> (i32, i32) {
    %c0_i32 = arith.constant 0 : i32
    %c0_i32_0 = arith.constant 0 : i32
    %c0_i32_1 = arith.constant 0 : i32
    return %c0_i32, %c0_i32_0 : i32, i32
  }
  func.func @transform_3(%arg0: i32) -> (i32, i32) {
    %c0_i32 = arith.constant 0 : i32
    %c0_i32_0 = arith.constant 0 : i32
    return %arg0, %c0_i32 : i32, i32
  }
}

</mosaic_0001>

<bundles_post_ra>
// kernel: glm_block_forward.8
= control target key start
LH: loop header
LB: loop body
LE: loop exit
PB: predicated region body
PF: predicated region fallthrough
CT: control target
= control target key end

     0   :  { %vm16_vm0 = vcmask 261120   ;;  %vm70_vm1 = vcmask 257024   ;;  %s129_s0 = inlined_call_operand.vmem [shape: f32[16,32], index: 0, kind: input, shape index: {}]   ;;  %s130_s1 = inlined_call_operand.vmem [shape: f32[1,32], index: 1, kind: input, shape index: {}]   ;;  %s131_s2 = inlined_call_operand.vmem [shape: f32[1,32], index: 2, kind: input, shape index: {}]   ;;  %s132_s3 = inlined_call_operand.vmem [shape: bf16[16,32], index: 3, kind: output, shape index: {}]  }
   0x1   :  { %v14_v0 = vld [vmem:[%s129_s0] sm:$0xff]  ;;  %v15_v1 = vld [vmem:[%s129_s0 + $0x8] sm:$0xff] }
   0x2   :  { %v17_v2 = vsel %vm16_vm0, %v14_v0, 0.0  ;;  %v20_v3 = vsel %vm16_vm0, %v15_v1, 0.0  ;;  %v77_v21 = vld [vmem:[%s130_s1] ss:$0 sm:$0xff] }
   0x3   :  { %18 = vadd.xlane.f32.xlu0 %v17_v2  ;;  %v78_v23 = vld [vmem:[%s131_s2] ss:$0 sm:$0xff] }
   0x7   :  { %21 = vadd.xlane.f32.xlu0 %v20_v3 }
  0x8c   :  { %v19_v4 = vpop.xlane.xlu0 %18 }
  0x8d   :  { %v24_v5 = vmul.f32 0.03125, %v19_v4 }
  0x8f   :  { %v26_v6 = vsub.f32 %v14_v0, %v24_v5 }
  0x90   :  { %v22_v7 = vpop.xlane.xlu0 %21 }
  0x91   :  { %v25_v8 = vmul.f32 0.03125, %v22_v7  ;;  %v28_v9 = vmul.f32 %v26_v6, %v26_v6 }
  0x93   :  { %v27_v10 = vsub.f32 %v15_v1, %v25_v8  ;;  %v30_v11 = vsel %vm16_vm0, %v28_v9, 0.0 }
  0x94   :  { %31 = vadd.xlane.f32.xlu1 %v30_v11 }
  0x95   :  { %v29_v12 = vmul.f32 %v27_v10, %v27_v10 }
  0x97   :  { %v33_v13 = vsel %vm16_vm0, %v29_v12, 0.0 }
  0x98   :  { %34 = vadd.xlane.f32.xlu1 %v33_v13 }
 0x11d   :  { %v32_v14 = vpop.xlane.xlu1 %31 }
 0x11e   :  { %v36_v15 = vmul.f32 0.03125, %v32_v14 }
 0x120   :  { %v38_v16 = vadd.f32 1e-05, %v36_v15 }
 0x121   :  { %v35_v17 = vpop.xlane.xlu1 %34 }
 0x122   :  { %83 = vrsqrt.f32 %v38_v16  ;;  %v37_v18 = vmul.f32 0.03125, %v35_v17 }
 0x124   :  { %v39_v19 = vadd.f32 1e-05, %v37_v18 }
 0x126   :  { %85 = vrsqrt.f32 %v39_v19 }
 0x12f   :  { %v84_v20 = vpop.eup %83 }
 0x130   :  { %v42_v22 = vmul.f32 %v84_v20, %v26_v6 }
 0x132   :  { %v51_v24 = vmul.f32 %v77_v21, %v42_v22 }
 0x133   :  { %v86_v25 = vpop.eup %85 }
 0x134   :  { %v60_v26 = vadd.f32 %v78_v23, %v51_v24  ;;  %v43_v27 = vmul.f32 %v86_v25, %v27_v10 }
 0x136   :  { %v81_v28 = vpack.c.bf16 %v60_v26, %v60_v26  ;;  %v52_v29 = vmul.f32 %v77_v21, %v43_v27 }
 0x138   :  { %71 = vst.msk [vmem:[%s132_s3] sm:$0xf] %vm70_vm1, %v81_v28  ;;  %v61_v30 = vadd.f32 %v78_v23, %v52_v29 }
 0x13a   :  { %v82_v31 = vpack.c.bf16 %v61_v30, %v61_v30 }
 0x13c   :  { %72 = vst.msk [vmem:[%s132_s3 + $0x4] sm:$0xf] %vm70_vm1, %v82_v31 }

// kernel: glm_block_forward.9
= control target key start
LH: loop header
LB: loop body
LE: loop exit
PB: predicated region body
PF: predicated region fallthrough
CT: control target
= control target key end

     0   :  { %vm73_vm0 = vcmask 261120   ;;  %vm19_vm1 = vcmask 785408   ;;  %v202_v0 = vmov 0.0   ;;  %vm203_vm2 = vmmov 0   ;;  %s267_s1 = inlined_call_operand.vmem [shape: bf16[96,32], index: 1, kind: input, shape index: {}]   ;;  %s268_s0 = inlined_call_operand.vmem [shape: bf16[16,32], index: 0, kind: input, shape index: {}]   ;;  %s269_s2 = inlined_call_operand.vmem [shape: f32[1,96], index: 2, kind: input, shape index: {}]   ;;  %s270_s3 = inlined_call_operand.vmem [shape: f32[16,96], index: 3, kind: output, shape index: {}]  }
   0x1   :  { %177 = vmatprep.subr.bf16.mxu0 %v202_v0  ;;  %v195_v1 = vld [vmem:[%s267_s1 + $0x28] sm:$0xff]   ;;  %189 = vmatprep.mubr.msk.bf16.mxu0 %vm203_vm2, %v202_v0  ;;  %20 = vst.msk [vmem:[#allocation2] sm:$0xff] %vm19_vm1, %v202_v0  ;;  %21 = vst.msk [vmem:[#allocation2 + $0x8] sm:$0xff] %vm19_vm1, %v202_v0  ;;  %v196_v3 = vld [vmem:[%s267_s1 + $0x20] sm:$0xff]  }
   0x2   :  { %v93_v2 = vsel %vm73_vm0, %v195_v1, 0  ;;  %v90_v4 = vsel %vm73_vm0, %v196_v3, 0  ;;  %v197_v5 = vld [vmem:[%s267_s1 + $0x18] sm:$0xff]   ;;  %v198_v7 = vld [vmem:[%s267_s1 + $0x10] sm:$0xff]   ;;  %v199_v9 = vld [vmem:[%s267_s1 + $0x8] sm:$0xff]  }
   0x3   :  { %178 = vmatpush3.bf16.xpose.msra.mxu0 %v93_v2  ;;  %v87_v6 = vsel %vm73_vm0, %v197_v5, 0  ;;  %v84_v8 = vsel %vm73_vm0, %v198_v7, 0  ;;  %v81_v10 = vsel %vm73_vm0, %v199_v9, 0  ;;  %v200_v11 = vld [vmem:[%s267_s1] sm:$0xff]  }
   0x4   :  { %179 = vmatprep.subr.bf16.mxu0 %v202_v0  ;;  %v78_v12 = vsel %vm73_vm0, %v200_v11, 0  ;;  %v201_v13 = vld [vmem:[%s268_s0] sm:$0xff]  }
   0x5   :  { %v169_v22 = vld [vmem:[%s269_s2] ss:$0 sm:$0xff] }
   0x8   :  { %v22_v14 = vld [vmem:[#allocation2] sm:$0xff]  ;;  %v23_v18 = vld [vmem:[#allocation2 + $0x8] sm:$0xff] }
   0xb   :  { %180 = vmatpush3.bf16.xpose.msra.mxu0 %v90_v4 }
   0xc   :  { %181 = vmatprep.subr.bf16.mxu0 %v202_v0 }
  0x13   :  { %182 = vmatpush3.bf16.xpose.msra.mxu0 %v87_v6 }
  0x14   :  { %183 = vmatprep.subr.bf16.mxu0 %v202_v0 }
  0x1b   :  { %184 = vmatpush3.bf16.xpose.msra.mxu0 %v84_v8 }
  0x1c   :  { %185 = vmatprep.subr.bf16.mxu0 %v202_v0 }
  0x23   :  { %186 = vmatpush3.bf16.xpose.msra.mxu0 %v81_v10 }
  0x24   :  { %187 = vmatprep.subr.bf16.mxu0 %v202_v0 }
  0x2b   :  { %188 = vmatpush3.bf16.xpose.msra.mxu0 %v78_v12 }
  0x32   :  { %190 = vmatmul.mubr.msk.bf16.vlgmr.msra.gmra.mxu0 %vm73_vm0, %v201_v13 }
  0xf2   :  { %v129_v15 = vpop.f32.mrf.mxu0 }
  0xf3   :  { %v136_v16 = vadd.f32 %v129_v15, %v22_v14 }
  0xf4   :  { %v191_v17 = vpop.f32.mrf.mxu0 }
  0xf5   :  { %139 = vst.msk [vmem:[#allocation2] sm:$0xff] %vm19_vm1, %v136_v16 }
  0xf6   :  { %v132_v19 = vpop.f32.mrf.mxu0 }
  0xf7   :  { %v137_v20 = vadd.f32 %v132_v19, %v23_v18 }
  0xf8   :  { %v192_v21 = vpop.f32.mrf.mxu0 }
  0xf9   :  { %140 = vst.msk [vmem:[#allocation2 + $0x8] sm:$0xff] %vm19_vm1, %v137_v20 }
  0xfc   :  { %v144_v23 = vld [vmem:[#allocation2] sm:$0xff] }
  0xfd   :  { %v153_v24 = vadd.f32 %v169_v22, %v144_v23 }
  0xff   :  { %155 = vst.msk [vmem:[%s270_s3] sm:$0xff] %vm19_vm1, %v153_v24 }
 0x100   :  { %v145_v25 = vld [vmem:[#allocation2 + $0x8] sm:$0xff] }
 0x101   :  { %v154_v26 = vadd.f32 %v169_v22, %v145_v25 }
 0x103   :  { %156 = vst.msk [vmem:[%s270_s3 + $0x8] sm:$0xff] %vm19_vm1, %v154_v26 }

// kernel: split.0
= control target key start
LH: loop header
LB: loop body
LE: loop exit
PB: predicated region body
PF: predicated region fallthrough
CT: control target
= control target key end

     0   :  { %v3_v0 = vlaneseq  ;;  %s191_s14 = smov 112   ;;  %s330_s0 = inlined_call_operand.vmem [shape: f32[8,2,4,24], index: 0, kind: input, shape index: {}]   ;;  %s331_s1 = inlined_call_operand.vmem [shape: f32[8,2,4,8], index: 1, kind: output, shape index: {}]  }
   0x1   :  { %v162_v2 = vld [vmem:[%s330_s0 + $0x10] sm:$0xf]  ;;  %v2_v3 = vld [vmem:[%s330_s0] sm:$0xf]  ;;  %v164_v4 = vld [vmem:[%s330_s0 + $0x18] sm:$0xf] }
   0x2   :  { %v4_v1 = vand.u32 127, %v3_v0  ;;  %v160_v5 = vld [vmem:[%s330_s0 + $0x8] sm:$0xf]  ;;  %v166_v11 = vld [vmem:[%s330_s0 + $0x20] sm:$0xf] }
   0x3   :  { %v168_v10 = vld [vmem:[%s330_s0 + $0x28] sm:$0xf]  ;;  %v172_v14 = vld [vmem:[%s330_s0 + $0x38] sm:$0xf]  ;;  %v170_v15 = vld [vmem:[%s330_s0 + $0x30] sm:$0xf] }
   0x4   :  { %vm5_vm0 = vcmp.lt.s32.totalorder %v4_v1, 16  ;;  %v176_v18 = vld [vmem:[%s330_s0 + $0xc] sm:$0xf]  ;;  %v174_v19 = vld [vmem:[%s330_s0 + $0x4] sm:$0xf] }
   0x5   :  { %v25_v6 = vsel %vm5_vm0, 0, %v162_v2  ;;  %v6_v7 = vsel %vm5_vm0, 0, %v2_v3  ;;  %v35_v8 = vsel %vm5_vm0, 0, %v164_v4  ;;  %v15_v9 = vsel %vm5_vm0, 0, %v160_v5  ;;  %v180_v22 = vld [vmem:[%s330_s0 + $0x1c] sm:$0xf] }
   0x6   :  { %26 = vrot.lane.b32.xlu1 %v25_v6, %s191_s14  ;;  %7 = vrot.lane.b32.xlu0 %v6_v7, %s191_s14  ;;  %v55_v12 = vsel %vm5_vm0, 0, %v168_v10  ;;  %v45_v13 = vsel %vm5_vm0, 0, %v166_v11  ;;  %v75_v16 = vsel %vm5_vm0, 0, %v172_v14  ;;  %v65_v17 = vsel %vm5_vm0, 0, %v170_v15  ;;  %v178_v23 = vld [vmem:[%s330_s0 + $0x14] sm:$0xf] }
   0x7   :  { %v95_v20 = vsel %vm5_vm0, 0, %v176_v18  ;;  %v85_v21 = vsel %vm5_vm0, 0, %v174_v19  ;;  %v115_v24 = vsel %vm5_vm0, 0, %v180_v22  ;;  %v105_v25 = vsel %vm5_vm0, 0, %v178_v23  ;;  %v184_v26 = vld [vmem:[%s330_s0 + $0x2c] sm:$0xf] }
   0x8   :  { %v182_v27 = vld [vmem:[%s330_s0 + $0x24] sm:$0xf]  ;;  %v135_v28 = vsel %vm5_vm0, 0, %v184_v26  ;;  %v188_v30 = vld [vmem:[%s330_s0 + $0x3c] sm:$0xf] }
   0x9   :  { %v125_v29 = vsel %vm5_vm0, 0, %v182_v27  ;;  %v186_v31 = vld [vmem:[%s330_s0 + $0x34] sm:$0xf]  ;;  %v155_v32 = vsel %vm5_vm0, 0, %v188_v30 }
   0xa   :  { %36 = vrot.lane.b32.xlu1 %v35_v8, %s191_s14  ;;  %16 = vrot.lane.b32.xlu0 %v15_v9, %s191_s14  ;;  %v145_v33 = vsel %vm5_vm0, 0, %v186_v31 }
   0xe   :  { %56 = vrot.lane.b32.xlu1 %v55_v12, %s191_s14  ;;  %46 = vrot.lane.b32.xlu0 %v45_v13, %s191_s14 }
  0x12   :  { %76 = vrot.lane.b32.xlu1 %v75_v16, %s191_s14  ;;  %66 = vrot.lane.b32.xlu0 %v65_v17, %s191_s14 }
  0x16   :  { %96 = vrot.lane.b32.xlu1 %v95_v20, %s191_s14  ;;  %86 = vrot.lane.b32.xlu0 %v85_v21, %s191_s14 }
  0x1a   :  { %116 = vrot.lane.b32.xlu1 %v115_v24, %s191_s14  ;;  %106 = vrot.lane.b32.xlu0 %v105_v25, %s191_s14 }
  0x1e   :  { %136 = vrot.lane.b32.xlu1 %v135_v28, %s191_s14  ;;  %126 = vrot.lane.b32.xlu0 %v125_v29, %s191_s14 }
  0x22   :  { %156 = vrot.lane.b32.xlu1 %v155_v32, %s191_s14  ;;  %146 = vrot.lane.b32.xlu0 %v145_v33, %s191_s14 }
  0x78   :  { %v27_v34 = vpop.permute.xlu1 %26  ;;  %v8_v35 = vpop.permute.xlu0 %7 }
  0x79   :  { %163 = vst [vmem:[%s331_s1 + $0x10] sm:$0xf] %v27_v34  ;;  %9 = vst [vmem:[%s331_s1] sm:$0xf] %v8_v35 }
  0x7c   :  { %v37_v36 = vpop.permute.xlu1 %36  ;;  %v17_v37 = vpop.permute.xlu0 %16 }
  0x7d   :  { %165 = vst [vmem:[%s331_s1 + $0x18] sm:$0xf] %v37_v36  ;;  %161 = vst [vmem:[%s331_s1 + $0x8] sm:$0xf] %v17_v37 }
  0x80   :  { %v57_v38 = vpop.permute.xlu1 %56  ;;  %v47_v39 = vpop.permute.xlu0 %46 }
  0x81   :  { %169 = vst [vmem:[%s331_s1 + $0x28] sm:$0xf] %v57_v38  ;;  %167 = vst [vmem:[%s331_s1 + $0x20] sm:$0xf] %v47_v39 }
  0x84   :  { %v77_v40 = vpop.permute.xlu1 %76  ;;  %v67_v41 = vpop.permute.xlu0 %66 }
  0x85   :  { %173 = vst [vmem:[%s331_s1 + $0x38] sm:$0xf] %v77_v40  ;;  %171 = vst [vmem:[%s331_s1 + $0x30] sm:$0xf] %v67_v41 }
  0x88   :  { %v97_v42 = vpop.permute.xlu1 %96  ;;  %v87_v43 = vpop.permute.xlu0 %86 }
  0x89   :  { %177 = vst [vmem:[%s331_s1 + $0xc] sm:$0xf] %v97_v42  ;;  %175 = vst [vmem:[%s331_s1 + $0x4] sm:$0xf] %v87_v43 }
  0x8c   :  { %v117_v44 = vpop.permute.xlu1 %116  ;;  %v107_v45 = vpop.permute.xlu0 %106 }
  0x8d   :  { %181 = vst [vmem:[%s331_s1 + $0x1c] sm:$0xf] %v117_v44  ;;  %179 = vst [vmem:[%s331_s1 + $0x14] sm:$0xf] %v107_v45 }
  0x90   :  { %v137_v46 = vpop.permute.xlu1 %136  ;;  %v127_v47 = vpop.permute.xlu0 %126 }
  0x91   :  { %185 = vst [vmem:[%s331_s1 + $0x2c] sm:$0xf] %v137_v46  ;;  %183 = vst [vmem:[%s331_s1 + $0x24] sm:$0xf] %v127_v47 }
  0x94   :  { %v157_v48 = vpop.permute.xlu1 %156  ;;  %v147_v49 = vpop.permute.xlu0 %146 }
  0x95   :  { %189 = vst [vmem:[%s331_s1 + $0x3c] sm:$0xf] %v157_v48  ;;  %187 = vst [vmem:[%s331_s1 + $0x34] sm:$0xf] %v147_v49 }

// kernel: glm_block_forward.11
= control target key start
LH: loop header
LB: loop body
LE: loop exit
PB: predicated region body
PF: predicated region fallthrough
CT: control target
= control target key end

     0   :  { %vm22_vm0 = vcmask 261120   ;;  %v156_v0 = vmov 0.0   ;;  %vm157_vm1 = vmmov 0   ;;  %s213_s1 = inlined_call_operand.vmem [shape: bf16[32,32], index: 1, kind: input, shape index: {}]   ;;  %s214_s0 = inlined_call_operand.vmem [shape: bf16[16,32], index: 0, kind: input, shape index: {}]   ;;  %s215_s3 = inlined_call_operand.vmem [shape: bf16[16,32], index: 3, kind: input, shape index: {}]   ;;  %s216_s2 = inlined_call_operand.vmem [shape: f32[1,32], index: 2, kind: input, shape index: {}]   ;;  %s217_s4 = inlined_call_operand.vmem [shape: f32[16,32], index: 4, kind: output, shape index: {}]  }
   0x1   :  { %143 = vmatprep.subr.bf16.mxu0 %v156_v0  ;;  %v153_v1 = vld [vmem:[%s213_s1 + $0x8] sm:$0xff]   ;;  %23 = vst.msk [vmem:[#allocation2] sm:$0xff] %vm22_vm0, %v156_v0  ;;  %24 = vst.msk [vmem:[#allocation2 + $0x8] sm:$0xff] %vm22_vm0, %v156_v0  ;;  %147 = vmatprep.mubr.msk.bf16.mxu0 %vm157_vm1, %v156_v0  ;;  %v154_v3 = vld [vmem:[%s213_s1] sm:$0xff]  }
   0x2   :  { %v56_v2 = vsel %vm22_vm0, %v153_v1, 0  ;;  %v53_v4 = vsel %vm22_vm0, %v154_v3, 0  ;;  %v155_v5 = vld [vmem:[%s214_s0] sm:$0xff]  }
   0x3   :  { %144 = vmatpush3.bf16.xpose.msra.mxu0 %v56_v2  ;;  %v137_v9 = vld [vmem:[%s215_s3] sm:$0xff]  }
   0x4   :  { %145 = vmatprep.subr.bf16.mxu0 %v156_v0  ;;  %v138_v13 = vunpack.c.l.bf16 %v137_v9  ;;  %v135_v16 = vld [vmem:[%s216_s2] ss:$0 sm:$0xff]  ;;  %v139_v18 = vunpack.c.h.bf16 %v137_v9 }
   0x6   :  { %v121_v17 = vmul.f32 2.0, %v138_v13  ;;  %v122_v22 = vmul.f32 2.0, %v139_v18 }
   0x8   :  { %v25_v6 = vld [vmem:[#allocation2] sm:$0xff]  ;;  %v26_v11 = vld [vmem:[#allocation2 + $0x8] sm:$0xff] }
   0xb   :  { %146 = vmatpush3.bf16.xpose.msra.mxu0 %v53_v4 }
  0x12   :  { %148 = vmatmul.mubr.msk.bf16.vlgmr.msra.gmra.mxu0 %vm22_vm0, %v155_v5 }
  0xd2   :  { %v92_v7 = vpop.f32.mrf.mxu0 }
  0xd3   :  { %v99_v8 = vadd.f32 %v92_v7, %v25_v6 }
  0xd4   :  { %v149_v10 = vpop.f32.mrf.mxu0 }
  0xd5   :  { %101 = vst.msk [vmem:[#allocation2] sm:$0xff] %vm22_vm0, %v99_v8 }
  0xd6   :  { %v95_v12 = vpop.f32.mrf.mxu0 }
  0xd7   :  { %v100_v14 = vadd.f32 %v95_v12, %v26_v11 }
  0xd8   :  { %v150_v15 = vpop.f32.mrf.mxu0 }
  0xd9   :  { %102 = vst.msk [vmem:[#allocation2 + $0x8] sm:$0xff] %vm22_vm0, %v100_v14 }
  0xdc   :  { %v106_v19 = vld [vmem:[#allocation2] sm:$0xff] }
  0xdd   :  { %v115_v20 = vadd.f32 %v135_v16, %v106_v19 }
  0xdf   :  { %v123_v21 = vadd.f32 %v121_v17, %v115_v20 }
  0xe0   :  { %v107_v23 = vld [vmem:[#allocation2 + $0x8] sm:$0xff] }
  0xe1   :  { %125 = vst.msk [vmem:[%s217_s4] sm:$0xff] %vm22_vm0, %v123_v21  ;;  %v116_v24 = vadd.f32 %v135_v16, %v107_v23 }
  0xe3   :  { %v124_v25 = vadd.f32 %v122_v22, %v116_v24 }
  0xe5   :  { %126 = vst.msk [vmem:[%s217_s4 + $0x8] sm:$0xff] %vm22_vm0, %v124_v25 }

// kernel: glm_block_forward.13
= control target key start
LH: loop header
LB: loop body
LE: loop exit
PB: predicated region body
PF: predicated region fallthrough
CT: control target
= control target key end

     0   :  { %vm86_vm0 = vcmask 261120   ;;  %v269_v0 = vmov 0.0   ;;  %vm270_vm1 = vmmov 0   ;;  %s333_s1 = inlined_call_operand.vmem [shape: bf16[128,32], index: 1, kind: input, shape index: {}]   ;;  %s334_s0 = inlined_call_operand.vmem [shape: bf16[16,32], index: 0, kind: input, shape index: {}]   ;;  %s335_s2 = inlined_call_operand.vmem [shape: f32[1,128], index: 2, kind: input, shape index: {}]   ;;  %s336_s3 = inlined_call_operand.vmem [shape: bf16[16,128], index: 3, kind: output, shape index: {}]  }
   0x1   :  { %234 = vmatprep.subr.bf16.mxu0 %v269_v0  ;;  %v256_v1 = vld [vmem:[%s333_s1 + $0x38] sm:$0xff]   ;;  %250 = vmatprep.mubr.msk.bf16.mxu0 %vm270_vm1, %v269_v0  ;;  %v257_v3 = vld [vmem:[%s333_s1 + $0x30] sm:$0xff]   ;;  %v258_v5 = vld [vmem:[%s333_s1 + $0x28] sm:$0xff]  }
   0x2   :  { %v112_v2 = vsel %vm86_vm0, %v256_v1, 0  ;;  %v109_v4 = vsel %vm86_vm0, %v257_v3, 0  ;;  %v106_v6 = vsel %vm86_vm0, %v258_v5, 0  ;;  %v259_v7 = vld [vmem:[%s333_s1 + $0x20] sm:$0xff]   ;;  %v260_v9 = vld [vmem:[%s333_s1 + $0x18] sm:$0xff]   ;;  %v261_v11 = vld [vmem:[%s333_s1 + $0x10] sm:$0xff]  }
   0x3   :  { %235 = vmatpush3.bf16.xpose.msra.mxu0 %v112_v2  ;;  %v103_v8 = vsel %vm86_vm0, %v259_v7, 0  ;;  %v100_v10 = vsel %vm86_vm0, %v260_v9, 0  ;;  %v97_v12 = vsel %vm86_vm0, %v261_v11, 0  ;;  %v262_v13 = vld [vmem:[%s333_s1 + $0x8] sm:$0xff]   ;;  %v263_v15 = vld [vmem:[%s333_s1] sm:$0xff]  }
   0x4   :  { %236 = vmatprep.subr.bf16.mxu0 %v269_v0  ;;  %v94_v14 = vsel %vm86_vm0, %v262_v13, 0  ;;  %v91_v16 = vsel %vm86_vm0, %v263_v15, 0  ;;  %v264_v17 = vld [vmem:[%s334_s0] sm:$0xff]  }
   0x5   :  { %v215_v18 = vld [vmem:[%s335_s2] ss:$0 sm:$0xff] }
   0xb   :  { %237 = vmatpush3.bf16.xpose.msra.mxu0 %v109_v4 }
   0xc   :  { %238 = vmatprep.subr.bf16.mxu0 %v269_v0 }
  0x13   :  { %239 = vmatpush3.bf16.xpose.msra.mxu0 %v106_v6 }
  0x14   :  { %240 = vmatprep.subr.bf16.mxu0 %v269_v0 }
  0x1b   :  { %241 = vmatpush3.bf16.xpose.msra.mxu0 %v103_v8 }
  0x1c   :  { %242 = vmatprep.subr.bf16.mxu0 %v269_v0 }
  0x23   :  { %243 = vmatpush3.bf16.xpose.msra.mxu0 %v100_v10 }
  0x24   :  { %244 = vmatprep.subr.bf16.mxu0 %v269_v0 }
  0x2b   :  { %245 = vmatpush3.bf16.xpose.msra.mxu0 %v97_v12 }
  0x2c   :  { %246 = vmatprep.subr.bf16.mxu0 %v269_v0 }
  0x33   :  { %247 = vmatpush3.bf16.xpose.msra.mxu0 %v94_v14 }
  0x34   :  { %248 = vmatprep.subr.bf16.mxu0 %v269_v0 }
  0x3b   :  { %249 = vmatpush3.bf16.xpose.msra.mxu0 %v91_v16 }
  0x42   :  { %251 = vmatmul.mubr.msk.bf16.vlgmr.msra.gmra.mxu0 %vm86_vm0, %v264_v17 }
 0x102   :  { %v148_v19 = vpop.f32.mrf.mxu0 }
 0x103   :  { %v171_v20 = vadd.f32 %v215_v18, %v148_v19 }
 0x104   :  { %v252_v21 = vpop.f32.mrf.mxu0 }
 0x105   :  { %v175_v22 = vmul.f32 0.044715, %v171_v20  ;;  %v173_v38 = vmul.f32 0.5, %v171_v20 }
 0x106   :  { %v151_v23 = vpop.f32.mrf.mxu0 }
 0x107   :  { %v177_v24 = vmul.f32 %v175_v22, %v171_v20  ;;  %v172_v25 = vadd.f32 %v215_v18, %v151_v23 }
 0x108   :  { %v253_v26 = vpop.f32.mrf.mxu0 }
 0x109   :  { %v179_v27 = vmul.f32 %v177_v24, %v171_v20  ;;  %v176_v28 = vmul.f32 0.044715, %v172_v25  ;;  %v174_v39 = vmul.f32 0.5, %v172_v25 }
 0x10b   :  { %v181_v29 = vadd.f32 %v179_v27, %v171_v20  ;;  %v178_v30 = vmul.f32 %v176_v28, %v172_v25 }
 0x10d   :  { %v183_v31 = vmul.f32 0.7978846, %v181_v29  ;;  %v180_v32 = vmul.f32 %v178_v30, %v172_v25 }
 0x10f   :  { %265 = vtanh.f32 %v183_v31  ;;  %v182_v33 = vadd.f32 %v180_v32, %v172_v25 }
 0x111   :  { %v184_v34 = vmul.f32 0.7978846, %v182_v33 }
 0x113   :  { %267 = vtanh.f32 %v184_v34 }
 0x11c   :  { %v266_v35 = vpop.eup %265 }
 0x11d   :  { %v187_v36 = vadd.f32 1.0, %v266_v35 }
 0x11f   :  { %v189_v41 = vmul.f32 %v187_v36, %v173_v38 }
 0x120   :  { %v268_v37 = vpop.eup %267 }
 0x121   :  { %v188_v40 = vadd.f32 1.0, %v268_v37 }
 0x123   :  { %v190_v42 = vmul.f32 %v188_v40, %v174_v39 }
 0x125   :  { %v223_v43 = vpack.c.bf16 %v190_v42, %v189_v41 }
 0x127   :  { %224 = vst [vmem:[%s336_s3] sm:$0xff] %v223_v43  }

// kernel: glm_block_forward.10
= control target key start
LH: loop header
LB: loop body
LE: loop exit
PB: predicated region body
PF: predicated region fallthrough
CT: control target
= control target key end

     0   :  { %s913_s15 = smov 0   ;;  %s915_s16 = smov 0   ;;  %s998_s0 = inlined_call_operand.vmem [shape: bf16[2,4,8,8], index: 0, kind: input, shape index: {}]   ;;  %s999_s1 = inlined_call_operand.vmem [shape: bf16[2,4,12,8], index: 1, kind: input, shape index: {}]   ;;  %s1000_s2 = inlined_call_operand.vmem [shape: bf16[2,4,12,8], index: 2, kind: input, shape index: {}]   ;;  %s1001_s3 = inlined_call_operand.vmem [shape: bf16[2,1,8,12], index: 3, kind: input, shape index: {}]   ;;  %s1002_s4 = inlined_call_operand.vmem [shape: bf16[2,4,8,8], index: 4, kind: output, shape index: {}]  }
   0x1   :  { %s917_s17 = smov 0   ;;  %s919_s18 = smov 0  }
   0x2   :  { %s921_s19 = smov 0  }
   0x3 LB: > { %s36_s20 = sadd.s32 1, %s874_s17  ;;  %s40_s21 = sadd.s32 1, %s878_s18  ;;  %s882_s19 = sphi %s921_s19, %s14_s19   ;;  %s878_s18 = sphi %s919_s18, %s1006_s18   ;;  %s874_s17 = sphi %s917_s17, %s1005_s17   ;;  %s870_s16 = sphi %s915_s16, %s1004_s16   ;;  %s866_s15 = sphi %s913_s15, %s1003_s15  }
   0x4   : > { %p38_p0 = scmp.ge.s32.totalorder %s36_s20, 4  ;;  %p756_p1 = scmp.ge.s32.totalorder %s882_s19, 1 }
   0x5   : > { %p267_p2 = scmp.lt.s32.totalorder %s882_s19, 9 }
   0x6   : > { %s1008_s20 = smov (%p38_p0, %s36_s20), 0  ;;  %s1010_s21 = smov (!%p38_p0, %s40_s21), %s878_s18 }
   0x7   : > { %p268_p3 = pnand %p756_p1, %p267_p2  ;;  %p42_p4 = scmp.ge.s32.totalorder %s1010_s21, 2 }
   0x8   : > { %p341_p5 = scmp.lt.s32.totalorder (!%p268_p3), %s870_s16, 1  ;;  %p343_p6 = scmp.lt.s32.totalorder (!%p268_p3), %s866_s15, 3 }
   0x9   : > { %s1012_s21 = smov (%p42_p4, %s1010_s21), 0  ;;  %271 = sbr.rel (%p268_p3) target bundleno = 800 (0x320), region = 36 }
   0xe   : > { %vm412_vm0 = vcmask 64512   ;;  %v884_v0 = vmov 0.0   ;;  %vm885_vm1 = vmmov 0   ;;  %s1014_s16 = smov (!%p341_p5, %s870_s16), 1  ;;  %s1016_s15 = smov (!%p343_p6, %s866_s15), 3  ;;  %v886_v4 = vmov 0  }
   0xf   : > { %778 = vmatprep.subr.bf16.mxu0 %v884_v0  ;;  %413 = vst.msk [vmem:[#allocation4] sm:$0xff] %vm412_vm0, %v884_v0  ;;  %780 = vmatprep.mubr.msk.bf16.mxu0 %vm885_vm1, %v884_v0  ;;  %s760_s22 = sshll.u32 %s1014_s16, 3  ;;  %s757_s23 = sshll.u32 %s1014_s16, 2  ;;  %vm409_vm2 = vcmask 7168   ;;  %v887_v5 = vmov -inf   ;;  %vm477_vm5 = vcmask 97280  }
  0x10   : > { %784 = vmatprep.subr.bf16.mxu1 %v884_v0  ;;  %786 = vmatprep.mubr.msk.bf16.mxu1 %vm885_vm1, %v884_v0  ;;  %s759_s24 = sshll.u32 %s1016_s15, 1  ;;  %s947_s27 = sadd.s32 %s757_s23, %s1016_s15  ;;  %410 = vst.msk [vmem:[#allocation2] sm:$0xff] %vm409_vm2, %v887_v5  ;;  %411 = vst.msk [vmem:[#allocation3] sm:$0xff] %vm409_vm2, %v884_v0  ;;  %vm519_vm6 = vcmask 1045504   ;;  %vm579_vm7 = vcmask 60416  }
  0x11   : > { %s944_s25 = sadd.s32 %s760_s22, %s759_s24  ;;  %s758_s5 = sshll.u32 %s947_s27, 2  ;;  %834 = vset.pattern.permute.xlu0 %v886_v4  ;;  %835 = vset.pattern.permute.xlu1 %v886_v4 }
  0x12   : > { %s761_s26 = sshll.u32 %s944_s25, 2  ;;  %s351_s8 = scalar_lea.vmem %s998_s0, %s758_s5 }
  0x13   : > { %s364_s30 = scalar_lea.vmem %s999_s1, %s761_s26  ;;  %v414_v3 = vld [vmem:[%s351_s8] sm:$0xf]  ;;  %s389_s11 = scalar_lea.vmem %s1001_s3, %s757_s23 }
  0x14   : > { %v836_v1 = vld [vmem:[%s364_s30] sm:$0x3f]   ;;  %s378_s14 = scalar_lea.vmem %s1000_s2, %s761_s26  ;;  %s400_s22 = scalar_lea.vmem %s1002_s4, %s758_s5 }
  0x15   : > { %v427_v2 = vsel %vm412_vm0, %v836_v1, 0  ;;  %v470_v6 = vld [vmem:[%s389_s11] sm:$0xf] }
  0x16   : > { %779 = vmatpush3.bf16.xpose.msra.mxu0 %v427_v2  ;;  %vm471_vm3 = vcmp.gt.bf16.partialorder %v470_v6, 1056980736  ;;  %v837_v20 = vld [vmem:[%s378_s14] sm:$0x3f]   ;;  %v501_v36 = vld [vmem:[#allocation4] sm:$0xff] }
  0x17   : > { %v472_v7 = vsel %vm471_vm3, 65537, %v886_v4  ;;  %v476_v16 = vld [vmem:[#allocation2] sm:$0xff]  ;;  %v521_v21 = vsel %vm519_vm6, %v837_v20, 0  ;;  %v493_v30 = vld [vmem:[#allocation3] sm:$0xff] }
  0x18   : > { %v473_v8 = vunpack.c.l.b16 %v472_v7  ;;  %785 = vmatpush3.bf16.msra.mxu1 %v521_v21 }
  0x1a   : > { %vm474_vm4 = vcmp.ne.s32.totalorder %v473_v8, 0 }
  0x1d   : > { %781 = vmatmul.mubr.msk.bf16.vlgmr.msra.gmra.mxu0 %vm412_vm0, %v414_v3 }
  0xdd   : > { %v463_v9 = vpop.f32.mrf.mxu0 }
  0xde   : > { %v469_v10 = vmul.f32 0.35355338, %v463_v9 }
  0xdf   : > { %v782_v11 = vpop.f32.mrf.mxu0 }
  0xe0   : > { %v475_v12 = vsel %vm474_vm4, -10000.0, %v469_v10 }
  0xe1   : > { %v466_v13 = vpop.f32.mrf.mxu0  ;;  %v478_v14 = vsel %vm477_vm5, %v475_v12, -inf }
  0xe2   : > { %479 = vmax.xlane.f32.xlu0 %v478_v14 }
  0xe3   : > { %v783_v15 = vpop.f32.mrf.mxu0 }
 0x16b   : > { %v480_v17 = vpop.xlane.xlu0 %479 }
 0x16c   : > { %v481_v18 = vmax.f32 %v476_v16, %v480_v17 }
 0x16e   : > { %v482_v19 = vsub.f32 %v476_v16, %v481_v18  ;;  %565 = vst.msk [vmem:[#allocation2] sm:$0xff] %vm409_vm2, %v481_v18  ;;  %487 = vperm.xlu0 %834, %v481_v18  }
 0x170   : > { %v483_v26 = vmul.f32 1.442695, %v482_v19 }
 0x1e9   : > { %v488_v22 = vpop.permute.xlu0 %487 }
 0x1ea   : > { %v490_v23 = vsub.f32 %v475_v12, %v488_v22 }
 0x1ec   : > { %v491_v24 = vmul.f32 1.442695, %v490_v23 }
 0x1ee   : > { %838 = vpow2.f32 %v491_v24 }
 0x1ef   : > { %840 = vpow2.f32 %v483_v26 }
 0x1fb   : > { %v839_v25 = vpop.eup %838 }
 0x1fc   : > { %v495_v27 = vsel %vm477_vm5, %v839_v25, 0.0  ;;  %v508_v28 = vpack.c.bf16 %v839_v25, %v839_v25  ;;  %v841_v29 = vpop.eup %840 }
 0x1fd   : > { %496 = vadd.xlane.f32.xlu1 %v495_v27  ;;  %v494_v31 = vmul.f32 %v841_v29, %v493_v30 }
 0x1fe   : > { %787 = vmatmul.mubr.msk.bf16.vlgmr.msra.gmra.mxu1 %vm477_vm5, %v508_v28 }
 0x20e   : > { %504 = vperm.xlu1 %835, %v841_v29  }
 0x286   : > { %v497_v32 = vpop.xlane.xlu1 %496 }
 0x287   : > { %v498_v33 = vadd.f32 %v497_v32, %v494_v31 }
 0x289   : > { %500 = vst.msk [vmem:[#allocation3] sm:$0xff] %vm409_vm2, %v498_v33 }
 0x28a   : > { %v505_v37 = vpop.permute.xlu1 %504 }
 0x28b   : > { %v507_v38 = vmul.f32 %v505_v37, %v501_v36 }
 0x290   : > { %v569_v34 = vld [vmem:[#allocation3] sm:$0xff] }
 0x291   : > { %842 = vrcp.f32 %v569_v34 }
 0x29e   : > { %v843_v35 = vpop.eup %842 }
 0x29f   : > { %574 = vperm.xlu1 %835, %v843_v35  }
 0x2be   : > { %v557_v39 = vpop.f32.mrf.mxu1 }
 0x2bf   : > { %v563_v40 = vadd.f32 %v557_v39, %v507_v38 }
 0x2c0   : > { %v788_v41 = vpop.f32.mrf.mxu1 }
 0x2c1   : > { %564 = vst.msk [vmem:[#allocation4] sm:$0xff] %vm412_vm0, %v563_v40 }
 0x2c2   : > { %v560_v42 = vpop.f32.mrf.mxu1 }
 0x2c4   : > { %v789_v43 = vpop.f32.mrf.mxu1 }
 0x2c8   : > { %v571_v44 = vld [vmem:[#allocation4] sm:$0xff] }
 0x31a   : > { %v575_v45 = vpop.permute.xlu1 %574 }
 0x31b   : > { %v577_v46 = vmul.f32 %v575_v45, %v571_v44 }
 0x31d   : > { %v578_v47 = vpack.c.bf16 %v577_v46, %v577_v46 }
 0x31f   : > { %580 = vst.msk [vmem:[%s400_s22] sm:$0xf] %vm579_vm7, %v578_v47 }
 0x320 PF: > { %s14_s19 = sadd.s32 1, %s882_s19   ;;  %s1003_s15 = smov %s874_s17 }
 0x321   : > { %p11_p7 = scmp.ge.s32.totalorder %s14_s19, 10   ;;  %s1004_s16 = smov %s878_s18 }
 0x322   : > { %s1005_s17 = smov %s1008_s20  ;;  %s1006_s18 = smov %s1012_s21 }
 0x323   :  { %13 = sbr.rel (!%p11_p7) target bundleno = 3 (0x3), region = 83 }

// kernel: glm_block_forward.14
= control target key start
LH: loop header
LB: loop body
LE: loop exit
PB: predicated region body
PF: predicated region fallthrough
CT: control target
= control target key end

     0   :  { %vm22_vm0 = vcmask 261120   ;;  %v149_v0 = vmov 0.0   ;;  %vm150_vm1 = vmmov 0   ;;  %s203_s1 = inlined_call_operand.vmem [shape: bf16[32,128], index: 1, kind: input, shape index: {}]   ;;  %s204_s0 = inlined_call_operand.vmem [shape: bf16[16,128], index: 0, kind: input, shape index: {}]   ;;  %s205_s3 = inlined_call_operand.vmem [shape: bf16[16,32], index: 3, kind: input, shape index: {}]   ;;  %s206_s2 = inlined_call_operand.vmem [shape: f32[1,32], index: 2, kind: input, shape index: {}]   ;;  %s207_s4 = inlined_call_operand.vmem [shape: f32[16,32], index: 4, kind: output, shape index: {}]  }
   0x1   :  { %136 = vmatprep.subr.bf16.mxu0 %v149_v0  ;;  %v146_v1 = vld [vmem:[%s203_s1 + $0x8] sm:$0xff]   ;;  %140 = vmatprep.mubr.msk.bf16.mxu0 %vm150_vm1, %v149_v0  ;;  %23 = vst.msk [vmem:[#allocation2] sm:$0xff] %vm22_vm0, %v149_v0  ;;  %24 = vst.msk [vmem:[#allocation2 + $0x8] sm:$0xff] %vm22_vm0, %v149_v0  ;;  %v147_v2 = vld [vmem:[%s203_s1] sm:$0xff]  }
   0x2   :  { %137 = vmatpush3.bf16.xpose.msra.mxu0 %v146_v1  ;;  %v148_v3 = vld [vmem:[%s204_s0] sm:$0xff]  }
   0x3   :  { %138 = vmatprep.subr.bf16.mxu0 %v149_v0  ;;  %v130_v7 = vld [vmem:[%s205_s3] sm:$0xff]  }
   0x4   :  { %v131_v11 = vunpack.c.l.bf16 %v130_v7  ;;  %v128_v14 = vld [vmem:[%s206_s2] ss:$0 sm:$0xff]  ;;  %v132_v15 = vunpack.c.h.bf16 %v130_v7 }
   0x6   :  { %v115_v16 = vmul.f32 2.0, %v131_v11  ;;  %v116_v19 = vmul.f32 2.0, %v132_v15 }
   0x8   :  { %v25_v4 = vld [vmem:[#allocation2] sm:$0xff]  ;;  %v26_v9 = vld [vmem:[#allocation2 + $0x8] sm:$0xff] }
   0xa   :  { %139 = vmatpush3.bf16.xpose.msra.mxu0 %v147_v2 }
  0x11   :  { %141 = vmatmul.mubr.bf16.vlgmr.msra.gmra.mxu0 %v148_v3 }
  0xd1   :  { %v85_v5 = vpop.f32.mrf.mxu0 }
  0xd2   :  { %v92_v6 = vadd.f32 %v85_v5, %v25_v4 }
  0xd3   :  { %v142_v8 = vpop.f32.mrf.mxu0 }
  0xd4   :  { %95 = vst.msk [vmem:[#allocation2] sm:$0xff] %vm22_vm0, %v92_v6 }
  0xd5   :  { %v88_v10 = vpop.f32.mrf.mxu0 }
  0xd6   :  { %v93_v12 = vadd.f32 %v88_v10, %v26_v9 }
  0xd7   :  { %v143_v13 = vpop.f32.mrf.mxu0 }
  0xd8   :  { %96 = vst.msk [vmem:[#allocation2 + $0x8] sm:$0xff] %vm22_vm0, %v93_v12 }
  0xdb   :  { %v100_v17 = vld [vmem:[#allocation2] sm:$0xff] }
  0xdc   :  { %v109_v18 = vadd.f32 %v128_v14, %v100_v17 }
  0xde   :  { %v117_v20 = vadd.f32 %v115_v16, %v109_v18 }
  0xdf   :  { %v101_v21 = vld [vmem:[#allocation2 + $0x8] sm:$0xff] }
  0xe0   :  { %119 = vst.msk [vmem:[%s207_s4] sm:$0xff] %vm22_vm0, %v117_v20  ;;  %v110_v22 = vadd.f32 %v128_v14, %v101_v21 }
  0xe2   :  { %v118_v23 = vadd.f32 %v116_v19, %v110_v22 }
  0xe4   :  { %120 = vst.msk [vmem:[%s207_s4 + $0x8] sm:$0xff] %vm22_vm0, %v118_v23 }

// kernel: glm_block_forward.15
= control target key start
LH: loop header
LB: loop body
LE: loop exit
PB: predicated region body
PF: predicated region fallthrough
CT: control target
= control target key end

     0   :  { %vm16_vm0 = vcmask 253952   ;;  %s111_s0 = inlined_call_operand.vmem [shape: f32[1,32], index: 0, kind: input, shape index: {}]   ;;  %s112_s1 = inlined_call_operand.vmem [shape: f32[1,32], index: 1, kind: input, shape index: {}]   ;;  %s113_s2 = inlined_call_operand.vmem [shape: f32[1,32], index: 2, kind: input, shape index: {}]   ;;  %s114_s3 = inlined_call_operand.hbm [shape: f32[1,32], index: 3, kind: output, shape index: {}]  }
   0x1   :  { %v15_v0 = vld [vmem:[%s111_s0] sm:$0x1] }
   0x2   :  { %8 = vsyncpa [#allocation3], 0  ;;  %v17_v1 = vsel %vm16_vm0, %v15_v0, 0.0  ;;  %v31_v11 = vld [vmem:[%s112_s1] sm:$0x1]  ;;  %s75_s17 = smov [#allocation2]  }
   0x3   :  { %18 = vadd.xlane.f32.xlu0 %v17_v1  ;;  %v33_v13 = vld [vmem:[%s113_s2] sm:$0x1]  ;;  %s42_s18 = sshll.u32 %s75_s17, 4  ;;  %s43_s18 = int_to_ptr.vmem [resolvable:$true] %s42_s18 }
   0x4   :  { %s53_s19 = scalar_lea.vmem %s43_s18, 16  ;;  %s57_s20 = scalar_lea.vmem %s43_s18, 32 }
   0x5   :  { %p54_p0 = scmp.ne.s32.totalorder %s43_s18, %s53_s19  ;;  %p58_p1 = scmp.lt.s32.totalorder %s43_s18, %s43_s18 }
   0x6   :  { %p59_p2 = scmp.lt.s32.totalorder %s57_s20, %s53_s19 }
   0x8   :  { %p60_p3 = por %p59_p2, %p58_p1 }
   0xa   :  { %p61_p4 = pnand %p60_p3, %p54_p0 }
  0x8c   :  { %v19_v2 = vpop.xlane.xlu0 %18 }
  0x8d   :  { %v21_v3 = vmul.f32 0.03125, %v19_v2 }
  0x8f   :  { %v22_v4 = vsub.f32 %v15_v0, %v21_v3 }
  0x91   :  { %v23_v5 = vmul.f32 %v22_v4, %v22_v4 }
  0x93   :  { %v24_v6 = vsel %vm16_vm0, %v23_v5, 0.0 }
  0x94   :  { %25 = vadd.xlane.f32.xlu0 %v24_v6 }
 0x11d   :  { %v26_v7 = vpop.xlane.xlu0 %25 }
 0x11e   :  { %v27_v8 = vmul.f32 0.03125, %v26_v7 }
 0x120   :  { %v28_v9 = vadd.f32 1e-05, %v27_v8 }
 0x122   :  { %51 = vrsqrt.f32 %v28_v9 }
 0x12f   :  { %v52_v10 = vpop.eup %51 }
 0x130   :  { %v30_v12 = vmul.f32 %v52_v10, %v22_v4 }
 0x132   :  { %v32_v14 = vmul.f32 %v31_v11, %v30_v12 }
 0x134   :  { %v34_v15 = vadd.f32 %v33_v13, %v32_v14 }
 0x136   :  { %35 = vst.msk [vmem:[#allocation2] sm:$0x1] %vm16_vm0, %v34_v15 }
 0x137   :  { %64 = shalt.err (!%p61_p4)
}
 0x138   :  { %45 = dma.vmem_to_hbm [thread:$0]  %s43_s18, 16, %s114_s3, [#allocation3]  }
 0x139   :  { %73 = dma.done.wait [#allocation3], 16  }
 0x13a   :  { %74 = vsyncadd [#allocation3], 4294967280 }
 0x13b   :  { %49 = vsyncpa [#allocation3], 1 }

</bundles_post_ra>
